<compile_context>
chip_gen: v7x
topology: tpu7x:2x2x1
jax: 0.10.0
libtpu: 0.0.40
codegen_flags: <defaults>
</compile_context>

<pallas_src>
import jax
import jax.numpy as jnp
from jax.experimental import pallas as pl
from jax.experimental.pallas import tpu as pltpu

INPUT_SIZE = 784
HIDDEN_SIZE = 500
NUM_CLASSES = 10

_SUBLANE = 8


def _round_up(n, m):
    return ((n + m - 1) // m) * m


def mlp_kernel(x_ref, w1_ref, b1_ref, w2_ref, b2_ref, out_ref, feat_ref):
    # One batch tile per grid step.  Both matmuls hit the MXU with f32
    # accumulation; tanh (EUP) and max (VPU) occupy different VLIW slots, so
    # the activation split is effectively free under the matmuls.
    x = x_ref[...]                                                      # (tm, 784)
    h = jnp.dot(x, w1_ref[...],
                preferred_element_type=jnp.float32) + b1_ref[...]       # (tm, 500)
    feat_ref[...] = jnp.tanh(h)                                         # tanh branch
    r = jnp.maximum(h, 0.0)                                             # relu branch
    out_ref[...] = jnp.dot(r, w2_ref[...],
                           preferred_element_type=jnp.float32) + b2_ref[...]  # (tm, 10)


def _pick_tm(batch, block_m):
    # Tile rows are a multiple of 8 sublanes; cap at ~batch/2 so mid-size
    # batches still get >= 2 grid steps (pipelining + v7x megacore sharding).
    half = _round_up(pl.cdiv(batch, 2), _SUBLANE)
    return max(_SUBLANE, min(block_m, half))


def neural_net_forward(x, w1, b1, w2, b2, *, block_m=512):
    """x: (B, 784) f32; w1: (500, 784); b1: (500,); w2: (10, 500); b2: (10,)."""
    B = x.shape[0]
    tm = _pick_tm(B, block_m)
    grid = (pl.cdiv(B, tm),)   # ragged last block handled by Pallas; no batch pad

    # Cheap, one-time weight prep (tiny arrays): transpose to (in, out) layout
    # and give biases a leading sublane dim.  No zero-padding anywhere.
    w1_t = jnp.asarray(w1, jnp.float32).T            # (784, 500)
    b1_r = jnp.asarray(b1, jnp.float32).reshape(1, HIDDEN_SIZE)
    w2_t = jnp.asarray(w2, jnp.float32).T            # (500, 10)
    b2_r = jnp.asarray(b2, jnp.float32).reshape(1, NUM_CLASSES)

    out, feature = pl.pallas_call(
        mlp_kernel,
        out_shape=(
            jax.ShapeDtypeStruct((B, NUM_CLASSES), jnp.float32),   # out
            jax.ShapeDtypeStruct((B, HIDDEN_SIZE), jnp.float32),   # feature
        ),
        grid=grid,
        in_specs=[
            pl.BlockSpec((tm, INPUT_SIZE), lambda i: (i, 0)),          # x tile/step
            pl.BlockSpec((INPUT_SIZE, HIDDEN_SIZE), lambda i: (0, 0)),  # W1: resident
            pl.BlockSpec((1, HIDDEN_SIZE), lambda i: (0, 0)),           # b1: resident
            pl.BlockSpec((HIDDEN_SIZE, NUM_CLASSES), lambda i: (0, 0)), # W2: resident
            pl.BlockSpec((1, NUM_CLASSES), lambda i: (0, 0)),           # b2: resident
        ],
        out_specs=(
            pl.BlockSpec((tm, NUM_CLASSES), lambda i: (i, 0)),
            pl.BlockSpec((tm, HIDDEN_SIZE), lambda i: (i, 0)),
        ),
        compiler_params=pltpu.CompilerParams(
            dimension_semantics=("parallel",),   # batch tiles shard over v7x's 2 TCs
            vmem_limit_bytes=32 << 20,           # ~13-15 MiB used at tm=512; OK on v7x
        ),
    )(x, w1_t, b1_r, w2_t, b2_r)

    return out, feature


if __name__ == "__main__":
    key = jax.random.PRNGKey(0)
    k_x, k_w1, k_b1, k_w2, k_b2 = jax.random.split(key, 5)

    batch = 8  # small smoke-test batch; real workloads should use >= 512 rows

    x = jax.random.normal(k_x, (batch, INPUT_SIZE), dtype=jnp.float32)

    # Deterministic parameter init (PyTorch-like uniform fan-in scaling).
    bound1 = 1.0 / (INPUT_SIZE ** 0.5)
    w1 = jax.random.uniform(k_w1, (HIDDEN_SIZE, INPUT_SIZE),
                            minval=-bound1, maxval=bound1, dtype=jnp.float32)
    b1 = jax.random.uniform(k_b1, (HIDDEN_SIZE,),
                            minval=-bound1, maxval=bound1, dtype=jnp.float32)
    bound2 = 1.0 / (HIDDEN_SIZE ** 0.5)
    w2 = jax.random.uniform(k_w2, (NUM_CLASSES, HIDDEN_SIZE),
                            minval=-bound2, maxval=bound2, dtype=jnp.float32)
    b2 = jax.random.uniform(k_b2, (NUM_CLASSES,),
                            minval=-bound2, maxval=bound2, dtype=jnp.float32)

    out, feature = neural_net_forward(x, w1, b1, w2, b2)
    jax.block_until_ready((out, feature))

    # Pure-JAX reference check.
    h_ref = x @ w1.T + b1
    out_ref = jnp.maximum(h_ref, 0.0) @ w2.T + b2
    feat_ref = jnp.tanh(h_ref)
    assert out.shape == (batch, NUM_CLASSES)
    assert feature.shape == (batch, HIDDEN_SIZE)
    assert jnp.allclose(out, out_ref, atol=1e-4, rtol=1e-4)
    assert jnp.allclose(feature, feat_ref, atol=1e-4, rtol=1e-4)

    print("KERNEL_OK")
</pallas_src>

<mosaic_0001>
module attributes {stable_mosaic.version = 11 : i64} {
  func.func @mlp_kernel(%arg0: i32, %arg1: memref<8x784xf32, #tpu.memory_space<vmem>>, %arg2: memref<784x500xf32, #tpu.memory_space<vmem>>, %arg3: memref<1x500xf32, #tpu.memory_space<vmem>>, %arg4: memref<500x10xf32, #tpu.memory_space<vmem>>, %arg5: memref<1x10xf32, #tpu.memory_space<vmem>>, %arg6: memref<8x10xf32, #tpu.memory_space<vmem>>, %arg7: memref<8x500xf32, #tpu.memory_space<vmem>>) attributes {dimension_semantics = [#tpu.dimension_semantics<parallel>], iteration_bounds = array<i64: 1>, scalar_prefetch = 0 : i64, scratch_operands = 0 : i64, tpu.core_type = #tpu.core_type<tc>, window_params = [{transform_indices = @transform_0, window_bounds = array<i64: 8, 784>}, {pipeline_mode = #tpu.pipeline_mode<synchronous>, transform_indices = @transform_1, window_bounds = array<i64: 784, 500>}, {pipeline_mode = #tpu.pipeline_mode<synchronous>, transform_indices = @transform_2, window_bounds = array<i64: 1, 500>}, {pipeline_mode = #tpu.pipeline_mode<synchronous>, transform_indices = @transform_3, window_bounds = array<i64: 500, 10>}, {pipeline_mode = #tpu.pipeline_mode<synchronous>, transform_indices = @transform_4, window_bounds = array<i64: 1, 10>}, {transform_indices = @transform_5, window_bounds = array<i64: 8, 10>}, {transform_indices = @transform_6, window_bounds = array<i64: 8, 500>}]} {
    %c0 = arith.constant 0 : index
    %c0_0 = arith.constant 0 : index
    %0 = vector.load %arg1[%c0, %c0_0] : memref<8x784xf32, #tpu.memory_space<vmem>>, vector<8x784xf32>
    %c0_1 = arith.constant 0 : index
    %c0_2 = arith.constant 0 : index
    %1 = vector.load %arg2[%c0_1, %c0_2] : memref<784x500xf32, #tpu.memory_space<vmem>>, vector<784x500xf32>
    %cst = arith.constant dense<0.000000e+00> : vector<8x500xf32>
    %2 = tpu.matmul %0, %1, %cst {dimension_numbers = #tpu.dot_dimension_numbers<[1], [0], [0], [1], [0, 0, 1, 1], [], []>} : vector<8x784xf32>, vector<784x500xf32>, vector<8x500xf32> -> vector<8x500xf32>
    %c0_3 = arith.constant 0 : index
    %c0_4 = arith.constant 0 : index
    %3 = vector.load %arg3[%c0_3, %c0_4] : memref<1x500xf32, #tpu.memory_space<vmem>>, vector<1x500xf32>
    %4 = vector.broadcast %3 : vector<1x500xf32> to vector<8x500xf32>
    %5 = arith.addf %2, %4 : vector<8x500xf32>
    %6 = math.tanh %5 : vector<8x500xf32>
    %c0_5 = arith.constant 0 : index
    %c0_6 = arith.constant 0 : index
    %7 = vector.load %arg7[%c0_5, %c0_6] : memref<8x500xf32, #tpu.memory_space<vmem>>, vector<8x500xf32>
    tpu.vector_store %arg7[%c0_5, %c0_6], %6 {strides = array<i32>} : memref<8x500xf32, #tpu.memory_space<vmem>>, vector<8x500xf32>,
    %cst_7 = arith.constant 0.000000e+00 : f32
    %8 = vector.broadcast %cst_7 : f32 to vector<8x500xf32>
    %9 = arith.maximumf %5, %8 : vector<8x500xf32>
    %c0_8 = arith.constant 0 : index
    %c0_9 = arith.constant 0 : index
    %10 = vector.load %arg4[%c0_8, %c0_9] : memref<500x10xf32, #tpu.memory_space<vmem>>, vector<500x10xf32>
    %cst_10 = arith.constant dense<0.000000e+00> : vector<8x10xf32>
    %11 = tpu.matmul %9, %10, %cst_10 {dimension_numbers = #tpu.dot_dimension_numbers<[1], [0], [0], [1], [0, 0, 1, 1], [], []>} : vector<8x500xf32>, vector<500x10xf32>, vector<8x10xf32> -> vector<8x10xf32>
    %c0_11 = arith.constant 0 : index
    %c0_12 = arith.constant 0 : index
    %12 = vector.load %arg5[%c0_11, %c0_12] : memref<1x10xf32, #tpu.memory_space<vmem>>, vector<1x10xf32>
    %13 = vector.broadcast %12 : vector<1x10xf32> to vector<8x10xf32>
    %14 = arith.addf %11, %13 : vector<8x10xf32>
    %c0_13 = arith.constant 0 : index
    %c0_14 = arith.constant 0 : index
    %15 = vector.load %arg6[%c0_13, %c0_14] : memref<8x10xf32, #tpu.memory_space<vmem>>, vector<8x10xf32>
    tpu.vector_store %arg6[%c0_13, %c0_14], %14 {strides = array<i32>} : memref<8x10xf32, #tpu.memory_space<vmem>>, vector<8x10xf32>,
    return
  }
  func.func @transform_0(%arg0: i32) -> (i32, i32) {
    %c0_i32 = arith.constant 0 : i32
    %c0_i32_0 = arith.constant 0 : i32
    return %arg0, %c0_i32 : i32, i32
  }
  func.func @transform_1(%arg0: i32) -> (i32, i32) {
    %c0_i32 = arith.constant 0 : i32
    %c0_i32_0 = arith.constant 0 : i32
    %c0_i32_1 = arith.constant 0 : i32
    return %c0_i32, %c0_i32_0 : i32, i32
  }
  func.func @transform_2(%arg0: i32) -> (i32, i32) {
    %c0_i32 = arith.constant 0 : i32
    %c0_i32_0 = arith.constant 0 : i32
    %c0_i32_1 = arith.constant 0 : i32
    return %c0_i32, %c0_i32_0 : i32, i32
  }
  func.func @transform_3(%arg0: i32) -> (i32, i32) {
    %c0_i32 = arith.constant 0 : i32
    %c0_i32_0 = arith.constant 0 : i32
    %c0_i32_1 = arith.constant 0 : i32
    return %c0_i32, %c0_i32_0 : i32, i32
  }
  func.func @transform_4(%arg0: i32) -> (i32, i32) {
    %c0_i32 = arith.constant 0 : i32
    %c0_i32_0 = arith.constant 0 : i32
    %c0_i32_1 = arith.constant 0 : i32
    return %c0_i32, %c0_i32_0 : i32, i32
  }
  func.func @transform_5(%arg0: i32) -> (i32, i32) {
    %c0_i32 = arith.constant 0 : i32
    %c0_i32_0 = arith.constant 0 : i32
    return %arg0, %c0_i32 : i32, i32
  }
  func.func @transform_6(%arg0: i32) -> (i32, i32) {
    %c0_i32 = arith.constant 0 : i32
    %c0_i32_0 = arith.constant 0 : i32
    return %arg0, %c0_i32 : i32, i32
  }
}

</mosaic_0001>

<bundles_post_ra>
// kernel: tpu_custom_call.1
= control target key start
LH: loop header
LB: loop body
LE: loop exit
PB: predicated region body
PF: predicated region fallthrough
CT: control target
= control target key end

     0   :  { %12 = vsyncpa [#allocation3], 0  ;;  %s2340_s0 = inlined_call_operand.hbm [shape: f32[8,784], index: 0, kind: input, shape index: {}]   ;;  %s2341_s1 = inlined_call_operand.hbm [shape: f32[784,500], index: 1, kind: input, shape index: {}]   ;;  %s2342_s2 = inlined_call_operand.hbm [shape: f32[1,500], index: 2, kind: input, shape index: {}]   ;;  %s2343_s3 = inlined_call_operand.vmem [shape: f32[500,10], index: 3, kind: input, shape index: {}]   ;;  %s2344_s4 = inlined_call_operand.hbm [shape: f32[1,10], index: 4, kind: input, shape index: {}]   ;;  %s2345_s5 = inlined_call_operand.hbm [shape: f32[8,10], index: 5, kind: output, shape index: {0}]   ;;  %s2346_s6 = inlined_call_operand.hbm [shape: f32[8,500], index: 6, kind: output, shape index: {1}]  }
   0x1   :  { %13 = vsyncpa [#allocation6], 0 }
   0x2   :  { %14 = vsyncpa [#allocation9], 0 }
   0x3   :  { %15 = vsyncpa [#allocation4], 0 }
   0x4   :  { %16 = vsyncpa [#allocation12], 0  ;;  %s2014_s21 = smov [#allocation5]   ;;  %s1872_s25 = scalar_lea.hbm %s2341_s1, 50176 }
   0x5   :  { %s32_s22 = sshll.u32 %s2014_s21, 4  ;;  %p1873_p0 = scmp.ne.s32.totalorder %s2341_s1, %s1872_s25  ;;  %s33_s22 = int_to_ptr.vmem [resolvable:$true] %s32_s22 }
   0x6   :  { %p1876_p1 = scmp.lt.u32.totalorder %s1872_s25, %s2341_s1 }
   0x8   :  { %p1878_p2 = pnand %p1876_p1, %p1873_p0 }
   0xa   :  { %1881 = shalt.err (!%p1878_p2)
}
   0xb   :  { %s1882_s30 = scalar_lea.vmem %s33_s22, 50176  ;;  %p1887_p4 = scmp.lt.s32.totalorder %s33_s22, %s33_s22 }
   0xc   :  { %p1883_p3 = scmp.ne.s32.totalorder %s33_s22, %s1882_s30  ;;  %p1888_p5 = scmp.lt.s32.totalorder %s1882_s30, %s1882_s30 }
   0xe   :  { %p1889_p6 = por %p1888_p5, %p1887_p4 }
  0x10   :  { %p1890_p7 = pnand %p1889_p6, %p1883_p3 }
  0x12   :  { %1893 = shalt.err (!%p1890_p7)
}
  0x13   :  { %s2015_s7 = smov 512   ;;  %s2016_s8 = smov 32  }
  0x14   :  { %38 = dma.hbm_to_vmem [thread:$0]  %s2341_s1, 50176, %s33_s22, [#allocation6], %s2015_s7, %s2015_s7, %s2016_s8  }
  0x15   :  { %s2017_s11 = smov [#allocation2]   ;;  %s2018_s13 = smov [#allocation7]  }
  0x16   :  { %s23_s12 = sshll.u32 %s2017_s11, 4  ;;  %s45_s14 = sshll.u32 %s2018_s13, 4  ;;  %s24_s12 = int_to_ptr.vmem [resolvable:$true] %s23_s12  ;;  %s46_s14 = int_to_ptr.vmem [resolvable:$true] %s45_s14 }
  0x17   :  { %s1894_s17 = scalar_lea.hbm %s2340_s0, 896 }
  0x18   :  { %p1895_p8 = scmp.ne.s32.totalorder %s2340_s0, %s1894_s17  ;;  %p1898_p9 = scmp.lt.u32.totalorder %s1894_s17, %s2340_s0 }
  0x1a   :  { %p1900_p10 = pnand %p1898_p9, %p1895_p8 }
  0x1c   :  { %1903 = shalt.err (!%p1900_p10)
}
  0x1d   :  { %s1904_s1 = scalar_lea.vmem %s24_s12, 896  ;;  %p1909_p12 = scmp.lt.s32.totalorder %s24_s12, %s24_s12 }
  0x1e   :  { %p1905_p11 = scmp.ne.s32.totalorder %s24_s12, %s1904_s1  ;;  %p1910_p13 = scmp.lt.s32.totalorder %s1904_s1, %s1904_s1 }
  0x20   :  { %p1911_p0 = por %p1910_p13, %p1909_p12 }
  0x22   :  { %p1912_p1 = pnand %p1911_p0, %p1905_p11 }
  0x24   :  { %1915 = shalt.err (!%p1912_p1)
}
  0x25   :  { %26 = dma.hbm_to_vmem [thread:$0]  %s2340_s0, 896, %s24_s12, [#allocation3]  }
  0x26   :  { %s1916_s26 = scalar_lea.hbm %s2342_s2, 64 }
  0x27   :  { %p1917_p2 = scmp.ne.s32.totalorder %s2342_s2, %s1916_s26  ;;  %p1920_p3 = scmp.lt.u32.totalorder %s1916_s26, %s2342_s2 }
  0x29   :  { %p1922_p4 = pnand %p1920_p3, %p1917_p2 }
  0x2b   :  { %1925 = shalt.err (!%p1922_p4)
}
  0x2c   :  { %s1926_s7 = scalar_lea.vmem %s46_s14, 64  ;;  %p1931_p6 = scmp.lt.s32.totalorder %s46_s14, %s46_s14 }
  0x2d   :  { %p1927_p5 = scmp.ne.s32.totalorder %s46_s14, %s1926_s7  ;;  %p1932_p7 = scmp.lt.s32.totalorder %s1926_s7, %s1926_s7 }
  0x2f   :  { %p1933_p8 = por %p1932_p7, %p1931_p6 }
  0x31   :  { %p1934_p9 = pnand %p1933_p8, %p1927_p5 }
  0x33   :  { %1937 = shalt.err (!%p1934_p9)
}
  0x34   :  { %48 = dma.hbm_to_vmem [thread:$0]  %s2342_s2, 64, %s46_s14, [#allocation6]  }
  0x35   :  { %s2019_s9 = smov [#allocation8]   ;;  %s1938_s13 = scalar_lea.hbm %s2344_s4, 16 }
  0x36   :  { %s57_s10 = sshll.u32 %s2019_s9, 4  ;;  %p1939_p10 = scmp.ne.s32.totalorder %s2344_s4, %s1938_s13  ;;  %s58_s10 = int_to_ptr.vmem [resolvable:$true] %s57_s10 }
  0x37   :  { %p1942_p11 = scmp.lt.u32.totalorder %s1938_s13, %s2344_s4 }
  0x39   :  { %p1944_p12 = pnand %p1942_p11, %p1939_p10 }
  0x3b   :  { %1947 = shalt.err (!%p1944_p12)
}
  0x3c   :  { %s1948_s19 = scalar_lea.vmem %s58_s10, 16  ;;  %s1952_s2 = scalar_lea.vmem %s58_s10, 32 }
  0x3d   :  { %p1949_p13 = scmp.ne.s32.totalorder %s58_s10, %s1948_s19  ;;  %p1953_p0 = scmp.lt.s32.totalorder %s58_s10, %s58_s10 }
  0x3e   :  { %p1954_p1 = scmp.lt.s32.totalorder %s1952_s2, %s1948_s19 }
  0x40   :  { %p1955_p2 = por %p1954_p1, %p1953_p0 }
  0x42   :  { %p1956_p3 = pnand %p1955_p2, %p1949_p13 }
  0x44   :  { %1959 = shalt.err (!%p1956_p3)
}
  0x45   :  { %60 = dma.hbm_to_vmem [thread:$0]  %s2344_s4, 16, %s58_s10, [#allocation9]  }
  0x46   :  { %2004 = dma.done.wait [#allocation3], 896  }
  0x47   :  { %2005 = vsyncadd [#allocation3], 4294966400 }
  0x48   :  { %2006 = dma.done.wait [#allocation6], 50240  }
  0x49   :  { %2007 = vsyncadd [#allocation6], 4294917056 }
  0x4a   :  { %2008 = dma.done.wait [#allocation9], 16  }
  0x4b   :  { %2009 = vsyncadd [#allocation9], 4294967280  ;;  %v81_v0 = vld [vmem:[#allocation5 + $0x8] sm:$0xff]  ;;  %v83_v2 = vld [vmem:[#allocation5 + $0x18] sm:$0xff]  ;;  %vm494_vm0 = vcmask 130048   ;;  %vm1152_vm1 = vcmask 1043456  }
  0x4c   :  { %v85_v1 = vld [vmem:[#allocation5 + $0x28] sm:$0xff]  ;;  %v87_v4 = vld [vmem:[#allocation5 + $0x38] sm:$0xff]  ;;  %v80_v5 = vld [vmem:[#allocation5] sm:$0xff]  ;;  %vm1073_vm2 = vcmask 949248  }
  0x4d   :  { %v1369_v3 = vpack.c.bf16 %v85_v1, %v81_v0  ;;  %v84_v6 = vld [vmem:[#allocation5 + $0x20] sm:$0xff]  ;;  %v1565_v7 = vpack.c.bf16 %v87_v4, %v83_v2  ;;  %v82_v9 = vld [vmem:[#allocation5 + $0x10] sm:$0xff]  ;;  %v89_v11 = vld [vmem:[#allocation5 + $0x48] sm:$0xff] }
  0x4e   :  { %v1371_v8 = vpack.c.bf16 %v84_v6, %v80_v5  ;;  %v86_v10 = vld [vmem:[#allocation5 + $0x30] sm:$0xff]  ;;  %v93_v13 = vld [vmem:[#allocation5 + $0x68] sm:$0xff]  ;;  %v91_v14 = vld [vmem:[#allocation5 + $0x58] sm:$0xff] }
  0x4f   :  { %1370 = vmatprep.subr.bf16.mxu0 %v1369_v3  ;;  %v1567_v12 = vpack.c.bf16 %v86_v10, %v82_v9  ;;  %v95_v15 = vld [vmem:[#allocation5 + $0x78] sm:$0xff]  ;;  %1566 = vmatprep.subr.bf16.mxu1 %v1565_v7  ;;  %v1373_v16 = vpack.c.bf16 %v93_v13, %v89_v11  ;;  %v88_v18 = vld [vmem:[#allocation5 + $0x40] sm:$0xff]  ;;  %v90_v20 = vld [vmem:[#allocation5 + $0x50] sm:$0xff] }
  0x50   :  { %1372 = vmatpush1.bf16.msra.mxu0 %v1371_v8  ;;  %v1569_v17 = vpack.c.bf16 %v95_v15, %v91_v14  ;;  %v92_v19 = vld [vmem:[#allocation5 + $0x60] sm:$0xff]  ;;  %v94_v22 = vld [vmem:[#allocation5 + $0x70] sm:$0xff]  ;;  %v97_v23 = vld [vmem:[#allocation5 + $0x88] sm:$0xff] }
  0x51   :  { %1568 = vmatpush1.bf16.msra.mxu1 %v1567_v12  ;;  %v1375_v21 = vpack.c.bf16 %v92_v19, %v88_v18  ;;  %v101_v24 = vld [vmem:[#allocation5 + $0xa8] sm:$0xff]  ;;  %1374 = vmatprep.subr.bf16.mxu0 %v1373_v16  ;;  %v1571_v25 = vpack.c.bf16 %v94_v22, %v90_v20  ;;  %v99_v27 = vld [vmem:[#allocation5 + $0x98] sm:$0xff]  ;;  %v96_v29 = vld [vmem:[#allocation5 + $0x80] sm:$0xff] }
  0x52   :  { %1570 = vmatprep.subr.bf16.mxu1 %v1569_v17  ;;  %v1377_v26 = vpack.c.bf16 %v101_v24, %v97_v23  ;;  %v103_v28 = vld [vmem:[#allocation5 + $0xb8] sm:$0xff]  ;;  %v100_v31 = vld [vmem:[#allocation5 + $0xa0] sm:$0xff]  ;;  %v98_v32 = vld [vmem:[#allocation5 + $0x90] sm:$0xff] }
  0x53   :  { %v1573_v30 = vpack.c.bf16 %v103_v28, %v99_v27  ;;  %v102_v33 = vld [vmem:[#allocation5 + $0xb0] sm:$0xff]  ;;  %v1379_v34 = vpack.c.bf16 %v100_v31, %v96_v29  ;;  %v105_v35 = vld [vmem:[#allocation5 + $0xc8] sm:$0xff]  ;;  %v107_v37 = vld [vmem:[#allocation5 + $0xd8] sm:$0xff] }
  0x54   :  { %1376 = vmatpush1.bf16.msra.mxu0 %v1375_v21  ;;  %v109_v36 = vld [vmem:[#allocation5 + $0xe8] sm:$0xff]  ;;  %v1575_v38 = vpack.c.bf16 %v102_v33, %v98_v32  ;;  %v111_v40 = vld [vmem:[#allocation5 + $0xf8] sm:$0xff]  ;;  %v104_v41 = vld [vmem:[#allocation5 + $0xc0] sm:$0xff] }
  0x55   :  { %1572 = vmatpush1.bf16.msra.mxu1 %v1571_v25  ;;  %1378 = vmatprep.subr.bf16.mxu0 %v1377_v26  ;;  %v1381_v39 = vpack.c.bf16 %v109_v36, %v105_v35  ;;  %v108_v42 = vld [vmem:[#allocation5 + $0xe0] sm:$0xff]  ;;  %v1577_v43 = vpack.c.bf16 %v111_v40, %v107_v37  ;;  %v106_v44 = vld [vmem:[#allocation5 + $0xd0] sm:$0xff]  ;;  %v113_v46 = vld [vmem:[#allocation5 + $0x108] sm:$0xff] }
  0x56   :  { %1574 = vmatprep.subr.bf16.mxu1 %v1573_v30  ;;  %v110_v45 = vld [vmem:[#allocation5 + $0xf0] sm:$0xff]  ;;  %v117_v47 = vld [vmem:[#allocation5 + $0x128] sm:$0xff]  ;;  %v115_v48 = vld [vmem:[#allocation5 + $0x118] sm:$0xff]  ;;  %v1383_v50 = vpack.c.bf16 %v108_v42, %v104_v41 }
  0x57   :  { %v119_v49 = vld [vmem:[#allocation5 + $0x138] sm:$0xff]  ;;  %v1579_v51 = vpack.c.bf16 %v110_v45, %v106_v44  ;;  %v1385_v52 = vpack.c.bf16 %v117_v47, %v113_v46  ;;  %v112_v53 = vld [vmem:[#allocation5 + $0x100] sm:$0xff]  ;;  %v114_v55 = vld [vmem:[#allocation5 + $0x110] sm:$0xff] }
  0x58   :  { %1380 = vmatpush1.bf16.msra.mxu0 %v1379_v34  ;;  %v116_v54 = vld [vmem:[#allocation5 + $0x120] sm:$0xff]  ;;  %v1581_v56 = vpack.c.bf16 %v119_v49, %v115_v48  ;;  %v118_v57 = vld [vmem:[#allocation5 + $0x130] sm:$0xff]  ;;  %v121_v58 = vld [vmem:[#allocation5 + $0x148] sm:$0xff] }
  0x59   :  { %1576 = vmatpush1.bf16.msra.mxu1 %v1575_v38  ;;  %1382 = vmatprep.subr.bf16.mxu0 %v1381_v39  ;;  %v125_v59 = vld [vmem:[#allocation5 + $0x168] sm:$0xff]  ;;  %v123_v60 = vld [vmem:[#allocation5 + $0x158] sm:$0xff]  ;;  %v1387_v62 = vpack.c.bf16 %v116_v54, %v112_v53  ;;  %v1583_v63 = vpack.c.bf16 %v118_v57, %v114_v55  ;;  %v120_v1 = vld [vmem:[#allocation5 + $0x140] sm:$0xff] }
  0x5a   :  { %1578 = vmatprep.subr.bf16.mxu1 %v1577_v43  ;;  %v127_v61 = vld [vmem:[#allocation5 + $0x178] sm:$0xff]  ;;  %v1389_v0 = vpack.c.bf16 %v125_v59, %v121_v58  ;;  %v124_v2 = vld [vmem:[#allocation5 + $0x160] sm:$0xff]  ;;  %v122_v3 = vld [vmem:[#allocation5 + $0x150] sm:$0xff] }
  0x5b   :  { %v1585_v4 = vpack.c.bf16 %v127_v61, %v123_v60  ;;  %v126_v5 = vld [vmem:[#allocation5 + $0x170] sm:$0xff]  ;;  %v129_v6 = vld [vmem:[#allocation5 + $0x188] sm:$0xff]  ;;  %v131_v8 = vld [vmem:[#allocation5 + $0x198] sm:$0xff]  ;;  %v1391_v10 = vpack.c.bf16 %v124_v2, %v120_v1 }
  0x5c   :  { %1384 = vmatpush1.bf16.msra.mxu0 %v1383_v50  ;;  %v133_v7 = vld [vmem:[#allocation5 + $0x1a8] sm:$0xff]  ;;  %v135_v9 = vld [vmem:[#allocation5 + $0x1b8] sm:$0xff]  ;;  %v1587_v11 = vpack.c.bf16 %v126_v5, %v122_v3  ;;  %v128_v13 = vld [vmem:[#allocation5 + $0x180] sm:$0xff] }
  0x5d   :  { %1580 = vmatpush1.bf16.msra.mxu1 %v1579_v51  ;;  %1386 = vmatprep.subr.bf16.mxu0 %v1385_v52  ;;  %v1393_v12 = vpack.c.bf16 %v133_v7, %v129_v6  ;;  %v132_v14 = vld [vmem:[#allocation5 + $0x1a0] sm:$0xff]  ;;  %v130_v15 = vld [vmem:[#allocation5 + $0x190] sm:$0xff]  ;;  %v1589_v16 = vpack.c.bf16 %v135_v9, %v131_v8  ;;  %v137_v18 = vld [vmem:[#allocation5 + $0x1c8] sm:$0xff] }
  0x5e   :  { %1582 = vmatprep.subr.bf16.mxu1 %v1581_v56  ;;  %v134_v17 = vld [vmem:[#allocation5 + $0x1b0] sm:$0xff]  ;;  %v141_v19 = vld [vmem:[#allocation5 + $0x1e8] sm:$0xff]  ;;  %v139_v20 = vld [vmem:[#allocation5 + $0x1d8] sm:$0xff]  ;;  %v1395_v22 = vpack.c.bf16 %v132_v14, %v128_v13 }
  0x5f   :  { %v143_v21 = vld [vmem:[#allocation5 + $0x1f8] sm:$0xff]  ;;  %v1591_v23 = vpack.c.bf16 %v134_v17, %v130_v15  ;;  %v1397_v24 = vpack.c.bf16 %v141_v19, %v137_v18  ;;  %v136_v25 = vld [vmem:[#allocation5 + $0x1c0] sm:$0xff]  ;;  %v138_v27 = vld [vmem:[#allocation5 + $0x1d0] sm:$0xff] }
  0x60   :  { %1388 = vmatpush1.bf16.msra.mxu0 %v1387_v62  ;;  %v140_v26 = vld [vmem:[#allocation5 + $0x1e0] sm:$0xff]  ;;  %v1593_v28 = vpack.c.bf16 %v143_v21, %v139_v20  ;;  %v142_v29 = vld [vmem:[#allocation5 + $0x1f0] sm:$0xff]  ;;  %v145_v30 = vld [vmem:[#allocation5 + $0x208] sm:$0xff] }
  0x61   :  { %1584 = vmatpush1.bf16.msra.mxu1 %v1583_v63  ;;  %1390 = vmatprep.subr.bf16.mxu0 %v1389_v0  ;;  %v149_v31 = vld [vmem:[#allocation5 + $0x228] sm:$0xff]  ;;  %v147_v32 = vld [vmem:[#allocation5 + $0x218] sm:$0xff]  ;;  %v1399_v34 = vpack.c.bf16 %v140_v26, %v136_v25  ;;  %v1595_v35 = vpack.c.bf16 %v142_v29, %v138_v27  ;;  %v144_v37 = vld [vmem:[#allocation5 + $0x200] sm:$0xff] }
  0x62   :  { %1586 = vmatprep.subr.bf16.mxu1 %v1585_v4  ;;  %v151_v33 = vld [vmem:[#allocation5 + $0x238] sm:$0xff]  ;;  %v1401_v36 = vpack.c.bf16 %v149_v31, %v145_v30  ;;  %v148_v38 = vld [vmem:[#allocation5 + $0x220] sm:$0xff]  ;;  %v146_v39 = vld [vmem:[#allocation5 + $0x210] sm:$0xff] }
  0x63   :  { %v1597_v40 = vpack.c.bf16 %v151_v33, %v147_v32  ;;  %v150_v41 = vld [vmem:[#allocation5 + $0x230] sm:$0xff]  ;;  %v153_v42 = vld [vmem:[#allocation5 + $0x248] sm:$0xff]  ;;  %v155_v44 = vld [vmem:[#allocation5 + $0x258] sm:$0xff]  ;;  %v1403_v46 = vpack.c.bf16 %v148_v38, %v144_v37 }
  0x64   :  { %1392 = vmatpush1.bf16.msra.mxu0 %v1391_v10  ;;  %v157_v43 = vld [vmem:[#allocation5 + $0x268] sm:$0xff]  ;;  %v159_v45 = vld [vmem:[#allocation5 + $0x278] sm:$0xff]  ;;  %v1599_v47 = vpack.c.bf16 %v150_v41, %v146_v39  ;;  %v152_v49 = vld [vmem:[#allocation5 + $0x240] sm:$0xff] }
  0x65   :  { %1588 = vmatpush1.bf16.msra.mxu1 %v1587_v11  ;;  %1394 = vmatprep.subr.bf16.mxu0 %v1393_v12  ;;  %v1405_v48 = vpack.c.bf16 %v157_v43, %v153_v42  ;;  %v156_v50 = vld [vmem:[#allocation5 + $0x260] sm:$0xff]  ;;  %v154_v51 = vld [vmem:[#allocation5 + $0x250] sm:$0xff]  ;;  %v1601_v52 = vpack.c.bf16 %v159_v45, %v155_v44  ;;  %v161_v54 = vld [vmem:[#allocation5 + $0x288] sm:$0xff] }
  0x66   :  { %1590 = vmatprep.subr.bf16.mxu1 %v1589_v16  ;;  %v158_v53 = vld [vmem:[#allocation5 + $0x270] sm:$0xff]  ;;  %v165_v55 = vld [vmem:[#allocation5 + $0x2a8] sm:$0xff]  ;;  %v163_v56 = vld [vmem:[#allocation5 + $0x298] sm:$0xff]  ;;  %v1407_v58 = vpack.c.bf16 %v156_v50, %v152_v49 }
  0x67   :  { %v167_v57 = vld [vmem:[#allocation5 + $0x2b8] sm:$0xff]  ;;  %v1603_v59 = vpack.c.bf16 %v158_v53, %v154_v51  ;;  %v1409_v60 = vpack.c.bf16 %v165_v55, %v161_v54  ;;  %v160_v61 = vld [vmem:[#allocation5 + $0x280] sm:$0xff]  ;;  %v162_v63 = vld [vmem:[#allocation5 + $0x290] sm:$0xff] }
  0x68   :  { %1396 = vmatpush1.bf16.msra.mxu0 %v1395_v22  ;;  %v164_v62 = vld [vmem:[#allocation5 + $0x2a0] sm:$0xff]  ;;  %v1605_v0 = vpack.c.bf16 %v167_v57, %v163_v56  ;;  %v166_v1 = vld [vmem:[#allocation5 + $0x2b0] sm:$0xff]  ;;  %v169_v2 = vld [vmem:[#allocation5 + $0x2c8] sm:$0xff] }
  0x69   :  { %1592 = vmatpush1.bf16.msra.mxu1 %v1591_v23  ;;  %1398 = vmatprep.subr.bf16.mxu0 %v1397_v24  ;;  %v173_v3 = vld [vmem:[#allocation5 + $0x2e8] sm:$0xff]  ;;  %v171_v4 = vld [vmem:[#allocation5 + $0x2d8] sm:$0xff]  ;;  %v1411_v6 = vpack.c.bf16 %v164_v62, %v160_v61  ;;  %v168_v7 = vld [vmem:[#allocation5 + $0x2c0] sm:$0xff]  ;;  %v1607_v8 = vpack.c.bf16 %v166_v1, %v162_v63 }
  0x6a   :  { %1594 = vmatprep.subr.bf16.mxu1 %v1593_v28  ;;  %v175_v5 = vld [vmem:[#allocation5 + $0x2f8] sm:$0xff]  ;;  %v1413_v9 = vpack.c.bf16 %v173_v3, %v169_v2  ;;  %v172_v10 = vld [vmem:[#allocation5 + $0x2e0] sm:$0xff]  ;;  %v170_v11 = vld [vmem:[#allocation5 + $0x2d0] sm:$0xff] }
  0x6b   :  { %v174_v12 = vld [vmem:[#allocation5 + $0x2f0] sm:$0xff]  ;;  %v1609_v13 = vpack.c.bf16 %v175_v5, %v171_v4  ;;  %v177_v14 = vld [vmem:[#allocation5 + $0x308] sm:$0xff]  ;;  %v179_v17 = vld [vmem:[#allocation5 + $0x318] sm:$0xff]  ;;  %v1415_v19 = vpack.c.bf16 %v172_v10, %v168_v7 }
  0x6c   :  { %1400 = vmatpush1.bf16.msra.mxu0 %v1399_v34  ;;  %v181_v15 = vld [vmem:[#allocation5 + $0x328] sm:$0xff]  ;;  %v74_v16 = vld [vmem:[#allocation2 + $0x8] sm:$0xff]  ;;  %v183_v18 = vld [vmem:[#allocation5 + $0x338] sm:$0xff]  ;;  %v1611_v20 = vpack.c.bf16 %v174_v12, %v170_v11 }
  0x6d   :  { %1596 = vmatpush1.bf16.msra.mxu1 %v1595_v35  ;;  %1402 = vmatprep.subr.bf16.mxu0 %v1401_v36  ;;  %v1417_v21 = vpack.c.bf16 %v181_v15, %v177_v14  ;;  %v176_v22 = vld [vmem:[#allocation5 + $0x300] sm:$0xff]  ;;  %v178_v24 = vld [vmem:[#allocation5 + $0x310] sm:$0xff]  ;;  %v1613_v25 = vpack.c.bf16 %v183_v18, %v179_v17  ;;  %v185_v27 = vld [vmem:[#allocation5 + $0x348] sm:$0xff] }
  0x6e   :  { %1598 = vmatprep.subr.bf16.mxu1 %v1597_v40  ;;  %562 = vmatprep.mubr.f32.mxu0 %v74_v16  ;;  %v180_v23 = vld [vmem:[#allocation5 + $0x320] sm:$0xff]  ;;  %v182_v26 = vld [vmem:[#allocation5 + $0x330] sm:$0xff]  ;;  %v189_v28 = vld [vmem:[#allocation5 + $0x368] sm:$0xff] }
  0x6f   :  { %846 = vmatprep.mubr.f32.mxu1 %v74_v16  ;;  %v187_v29 = vld [vmem:[#allocation5 + $0x358] sm:$0xff]  ;;  %v1419_v31 = vpack.c.bf16 %v180_v23, %v176_v22  ;;  %v1615_v32 = vpack.c.bf16 %v182_v26, %v178_v24  ;;  %v1421_v33 = vpack.c.bf16 %v189_v28, %v185_v27  ;;  %v184_v34 = vld [vmem:[#allocation5 + $0x340] sm:$0xff]  ;;  %v186_v36 = vld [vmem:[#allocation5 + $0x350] sm:$0xff] }
  0x70   :  { %1404 = vmatpush1.bf16.msra.mxu0 %v1403_v46  ;;  %v191_v30 = vld [vmem:[#allocation5 + $0x378] sm:$0xff]  ;;  %v188_v35 = vld [vmem:[#allocation5 + $0x360] sm:$0xff]  ;;  %v190_v38 = vld [vmem:[#allocation5 + $0x370] sm:$0xff] }
  0x71   :  { %1600 = vmatpush1.bf16.msra.mxu1 %v1599_v47  ;;  %1406 = vmatprep.subr.bf16.mxu0 %v1405_v48  ;;  %v1617_v37 = vpack.c.bf16 %v191_v30, %v187_v29  ;;  %v193_v39 = vld [vmem:[#allocation5 + $0x388] sm:$0xff]  ;;  %v195_v41 = vld [vmem:[#allocation5 + $0x398] sm:$0xff]  ;;  %v1423_v43 = vpack.c.bf16 %v188_v35, %v184_v34  ;;  %v1619_v44 = vpack.c.bf16 %v190_v38, %v186_v36  ;;  %v192_v46 = vld [vmem:[#allocation5 + $0x380] sm:$0xff] }
  0x72   :  { %1602 = vmatprep.subr.bf16.mxu1 %v1601_v52  ;;  %v197_v40 = vld [vmem:[#allocation5 + $0x3a8] sm:$0xff]  ;;  %v199_v42 = vld [vmem:[#allocation5 + $0x3b8] sm:$0xff]  ;;  %v196_v47 = vld [vmem:[#allocation5 + $0x3a0] sm:$0xff] }
  0x73   :  { %v1425_v45 = vpack.c.bf16 %v197_v40, %v193_v39  ;;  %v194_v48 = vld [vmem:[#allocation5 + $0x390] sm:$0xff]  ;;  %v1621_v49 = vpack.c.bf16 %v199_v42, %v195_v41  ;;  %v201_v51 = vld [vmem:[#allocation5 + $0x3c8] sm:$0xff]  ;;  %v203_v53 = vld [vmem:[#allocation5 + $0x3d8] sm:$0xff]  ;;  %v1427_v55 = vpack.c.bf16 %v196_v47, %v192_v46 }
  0x74   :  { %1408 = vmatpush1.bf16.msra.mxu0 %v1407_v58  ;;  %v198_v50 = vld [vmem:[#allocation5 + $0x3b0] sm:$0xff]  ;;  %v205_v52 = vld [vmem:[#allocation5 + $0x3e8] sm:$0xff]  ;;  %v207_v54 = vld [vmem:[#allocation5 + $0x3f8] sm:$0xff] }
  0x75   :  { %1604 = vmatpush1.bf16.msra.mxu1 %v1603_v59  ;;  %1410 = vmatprep.subr.bf16.mxu0 %v1409_v60  ;;  %v1623_v56 = vpack.c.bf16 %v198_v50, %v194_v48  ;;  %v1429_v57 = vpack.c.bf16 %v205_v52, %v201_v51  ;;  %v200_v58 = vld [vmem:[#allocation5 + $0x3c0] sm:$0xff]  ;;  %v202_v60 = vld [vmem:[#allocation5 + $0x3d0] sm:$0xff]  ;;  %v1625_v61 = vpack.c.bf16 %v207_v54, %v203_v53  ;;  %v209_v63 = vld [vmem:[#allocation5 + $0x408] sm:$0xff] }
  0x76   :  { %1606 = vmatprep.subr.bf16.mxu1 %v1605_v0  ;;  %v204_v59 = vld [vmem:[#allocation5 + $0x3e0] sm:$0xff]  ;;  %v206_v62 = vld [vmem:[#allocation5 + $0x3f0] sm:$0xff]  ;;  %v213_v0 = vld [vmem:[#allocation5 + $0x428] sm:$0xff] }
  0x77   :  { %v211_v1 = vld [vmem:[#allocation5 + $0x418] sm:$0xff]  ;;  %v1431_v3 = vpack.c.bf16 %v204_v59, %v200_v58  ;;  %v1627_v4 = vpack.c.bf16 %v206_v62, %v202_v60  ;;  %v1433_v5 = vpack.c.bf16 %v213_v0, %v209_v63  ;;  %v212_v7 = vld [vmem:[#allocation5 + $0x420] sm:$0xff]  ;;  %v214_v10 = vld [vmem:[#allocation5 + $0x430] sm:$0xff] }
  0x78   :  { %1412 = vmatpush1.bf16.msra.mxu0 %v1411_v6  ;;  %v215_v2 = vld [vmem:[#allocation5 + $0x438] sm:$0xff]  ;;  %v208_v6 = vld [vmem:[#allocation5 + $0x400] sm:$0xff]  ;;  %v217_v11 = vld [vmem:[#allocation5 + $0x448] sm:$0xff] }
  0x79   :  { %1608 = vmatpush1.bf16.msra.mxu1 %v1607_v8  ;;  %1414 = vmatprep.subr.bf16.mxu0 %v1413_v9  ;;  %v210_v8 = vld [vmem:[#allocation5 + $0x410] sm:$0xff]  ;;  %v1629_v9 = vpack.c.bf16 %v215_v2, %v211_v1  ;;  %v221_v12 = vld [vmem:[#allocation5 + $0x468] sm:$0xff]  ;;  %v223_v14 = vld [vmem:[#allocation5 + $0x478] sm:$0xff]  ;;  %v1435_v16 = vpack.c.bf16 %v212_v7, %v208_v6 }
  0x7a   :  { %1610 = vmatprep.subr.bf16.mxu1 %v1609_v13  ;;  %v219_v13 = vld [vmem:[#allocation5 + $0x458] sm:$0xff]  ;;  %v73_v15 = vld [vmem:[#allocation2] sm:$0xff]  ;;  %v1631_v17 = vpack.c.bf16 %v214_v10, %v210_v8  ;;  %v1437_v18 = vpack.c.bf16 %v221_v12, %v217_v11  ;;  %v222_v23 = vld [vmem:[#allocation5 + $0x470] sm:$0xff] }
  0x7b   :  { %v1633_v22 = vpack.c.bf16 %v223_v14, %v219_v13  ;;  %v225_v24 = vld [vmem:[#allocation5 + $0x488] sm:$0xff]  ;;  %v227_v26 = vld [vmem:[#allocation5 + $0x498] sm:$0xff]  ;;  %v230_v35 = vld [vmem:[#allocation5 + $0x4b0] sm:$0xff] }
  0x7c   :  { %1416 = vmatpush1.bf16.msra.mxu0 %v1415_v19  ;;  %v216_v19 = vld [vmem:[#allocation5 + $0x440] sm:$0xff]  ;;  %v231_v27 = vld [vmem:[#allocation5 + $0x4b8] sm:$0xff]  ;;  %v233_v36 = vld [vmem:[#allocation5 + $0x4c8] sm:$0xff] }
  0x7d   :  { %1612 = vmatpush1.bf16.msra.mxu1 %v1611_v20  ;;  %1418 = vmatprep.subr.bf16.mxu0 %v1417_v21  ;;  %v220_v20 = vld [vmem:[#allocation5 + $0x460] sm:$0xff]  ;;  %v218_v21 = vld [vmem:[#allocation5 + $0x450] sm:$0xff]  ;;  %v1637_v34 = vpack.c.bf16 %v231_v27, %v227_v26  ;;  %v235_v38 = vld [vmem:[#allocation5 + $0x4d8] sm:$0xff] }
  0x7e   :  { %1614 = vmatprep.subr.bf16.mxu1 %v1613_v25  ;;  %v229_v25 = vld [vmem:[#allocation5 + $0x4a8] sm:$0xff]  ;;  %v1439_v28 = vpack.c.bf16 %v220_v20, %v216_v19  ;;  %v1635_v29 = vpack.c.bf16 %v222_v23, %v218_v21  ;;  %v239_v39 = vld [vmem:[#allocation5 + $0x4f8] sm:$0xff]  ;;  %v238_v47 = vld [vmem:[#allocation5 + $0x4f0] sm:$0xff] }
  0x7f   :  { %v1441_v30 = vpack.c.bf16 %v229_v25, %v225_v24  ;;  %v1641_v46 = vpack.c.bf16 %v239_v39, %v235_v38  ;;  %v241_v48 = vld [vmem:[#allocation5 + $0x508] sm:$0xff]  ;;  %v243_v50 = vld [vmem:[#allocation5 + $0x518] sm:$0xff]  ;;  %v246_v59 = vld [vmem:[#allocation5 + $0x530] sm:$0xff] }
  0x80   :  { %1420 = vmatpush1.bf16.msra.mxu0 %v1419_v31  ;;  %v224_v31 = vld [vmem:[#allocation5 + $0x480] sm:$0xff]  ;;  %v247_v51 = vld [vmem:[#allocation5 + $0x538] sm:$0xff]  ;;  %v249_v60 = vld [vmem:[#allocation5 + $0x548] sm:$0xff] }
  0x81   :  { %1616 = vmatpush1.bf16.msra.mxu1 %v1615_v32  ;;  %1422 = vmatprep.subr.bf16.mxu0 %v1421_v33  ;;  %v228_v32 = vld [vmem:[#allocation5 + $0x4a0] sm:$0xff]  ;;  %v226_v33 = vld [vmem:[#allocation5 + $0x490] sm:$0xff]  ;;  %v1645_v58 = vpack.c.bf16 %v247_v51, %v243_v50  ;;  %v251_v62 = vld [vmem:[#allocation5 + $0x558] sm:$0xff] }
  0x82   :  { %1618 = vmatprep.subr.bf16.mxu1 %v1617_v37  ;;  %v237_v37 = vld [vmem:[#allocation5 + $0x4e8] sm:$0xff]  ;;  %v1443_v40 = vpack.c.bf16 %v228_v32, %v224_v31  ;;  %v1639_v41 = vpack.c.bf16 %v230_v35, %v226_v33  ;;  %v255_v63 = vld [vmem:[#allocation5 + $0x578] sm:$0xff]  ;;  %v254_v7 = vld [vmem:[#allocation5 + $0x570] sm:$0xff] }
  0x83   :  { %v1445_v42 = vpack.c.bf16 %v237_v37, %v233_v36  ;;  %v1649_v6 = vpack.c.bf16 %v255_v63, %v251_v62  ;;  %v257_v8 = vld [vmem:[#allocation5 + $0x588] sm:$0xff]  ;;  %v259_v10 = vld [vmem:[#allocation5 + $0x598] sm:$0xff]  ;;  %v256_v13 = vld [vmem:[#allocation5 + $0x580] sm:$0xff] }
  0x84   :  { %1424 = vmatpush1.bf16.msra.mxu0 %v1423_v43  ;;  %v232_v43 = vld [vmem:[#allocation5 + $0x4c0] sm:$0xff]  ;;  %v263_v11 = vld [vmem:[#allocation5 + $0x5b8] sm:$0xff]  ;;  %v265_v20 = vld [vmem:[#allocation5 + $0x5c8] sm:$0xff] }
  0x85   :  { %1620 = vmatpush1.bf16.msra.mxu1 %v1619_v44  ;;  %1426 = vmatprep.subr.bf16.mxu0 %v1425_v45  ;;  %v236_v44 = vld [vmem:[#allocation5 + $0x4e0] sm:$0xff]  ;;  %v234_v45 = vld [vmem:[#allocation5 + $0x4d0] sm:$0xff]  ;;  %v1653_v19 = vpack.c.bf16 %v263_v11, %v259_v10  ;;  %v269_v21 = vld [vmem:[#allocation5 + $0x5e8] sm:$0xff] }
  0x86   :  { %1622 = vmatprep.subr.bf16.mxu1 %v1621_v49  ;;  %v245_v49 = vld [vmem:[#allocation5 + $0x528] sm:$0xff]  ;;  %v1447_v52 = vpack.c.bf16 %v236_v44, %v232_v43  ;;  %v1643_v53 = vpack.c.bf16 %v238_v47, %v234_v45  ;;  %v267_v23 = vld [vmem:[#allocation5 + $0x5d8] sm:$0xff]  ;;  %v1461_v27 = vpack.c.bf16 %v269_v21, %v265_v20  ;;  %v270_v32 = vld [vmem:[#allocation5 + $0x5f0] sm:$0xff] }
  0x87   :  { %v1449_v54 = vpack.c.bf16 %v245_v49, %v241_v48  ;;  %v271_v24 = vld [vmem:[#allocation5 + $0x5f8] sm:$0xff]  ;;  %v273_v33 = vld [vmem:[#allocation5 + $0x608] sm:$0xff]  ;;  %v278_v44 = vld [vmem:[#allocation5 + $0x630] sm:$0xff] }
  0x88   :  { %1428 = vmatpush1.bf16.msra.mxu0 %v1427_v55  ;;  %v240_v55 = vld [vmem:[#allocation5 + $0x500] sm:$0xff]  ;;  %v1657_v31 = vpack.c.bf16 %v271_v24, %v267_v23  ;;  %v275_v35 = vld [vmem:[#allocation5 + $0x618] sm:$0xff]  ;;  %v281_v45 = vld [vmem:[#allocation5 + $0x648] sm:$0xff] }
  0x89   :  { %1624 = vmatpush1.bf16.msra.mxu1 %v1623_v56  ;;  %1430 = vmatprep.subr.bf16.mxu0 %v1429_v57  ;;  %v244_v56 = vld [vmem:[#allocation5 + $0x520] sm:$0xff]  ;;  %v242_v57 = vld [vmem:[#allocation5 + $0x510] sm:$0xff]  ;;  %v279_v36 = vld [vmem:[#allocation5 + $0x638] sm:$0xff] }
  0x8a   :  { %1626 = vmatprep.subr.bf16.mxu1 %v1625_v61  ;;  %v253_v61 = vld [vmem:[#allocation5 + $0x568] sm:$0xff]  ;;  %v1451_v0 = vpack.c.bf16 %v244_v56, %v240_v55  ;;  %v1647_v1 = vpack.c.bf16 %v246_v59, %v242_v57  ;;  %v1661_v43 = vpack.c.bf16 %v279_v36, %v275_v35  ;;  %v283_v47 = vld [vmem:[#allocation5 + $0x658] sm:$0xff]  ;;  %v286_v56 = vld [vmem:[#allocation5 + $0x670] sm:$0xff] }
  0x8b   :  { %v1453_v2 = vpack.c.bf16 %v253_v61, %v249_v60  ;;  %v287_v48 = vld [vmem:[#allocation5 + $0x678] sm:$0xff]  ;;  %v289_v57 = vld [vmem:[#allocation5 + $0x688] sm:$0xff]  ;;  %v304_v24 = vld [vmem:[#allocation5 + $0x700] sm:$0xff] }
  0x8c   :  { %1432 = vmatpush1.bf16.msra.mxu0 %v1431_v3  ;;  %v248_v3 = vld [vmem:[#allocation5 + $0x540] sm:$0xff]  ;;  %v1665_v55 = vpack.c.bf16 %v287_v48, %v283_v47  ;;  %v291_v59 = vld [vmem:[#allocation5 + $0x698] sm:$0xff] }
  0x8d   :  { %1628 = vmatpush1.bf16.msra.mxu1 %v1627_v4  ;;  %1434 = vmatprep.subr.bf16.mxu0 %v1433_v5  ;;  %v252_v4 = vld [vmem:[#allocation5 + $0x560] sm:$0xff]  ;;  %v250_v5 = vld [vmem:[#allocation5 + $0x550] sm:$0xff]  ;;  %v295_v60 = vld [vmem:[#allocation5 + $0x6b8] sm:$0xff] }
  0x8e   :  { %1630 = vmatprep.subr.bf16.mxu1 %v1629_v9  ;;  %v261_v9 = vld [vmem:[#allocation5 + $0x5a8] sm:$0xff]  ;;  %v1455_v12 = vpack.c.bf16 %v252_v4, %v248_v3  ;;  %v1651_v14 = vpack.c.bf16 %v254_v7, %v250_v5  ;;  %v1669_v3 = vpack.c.bf16 %v295_v60, %v291_v59  ;;  %v294_v4 = vld [vmem:[#allocation5 + $0x6b0] sm:$0xff]  ;;  %v299_v7 = vld [vmem:[#allocation5 + $0x6d8] sm:$0xff] }
  0x8f   :  { %563 = vmatmul.mubr.f32.vlgmr.msra.gmra.mrb[0].mxu0 %v73_v15  ;;  %v297_v5 = vld [vmem:[#allocation5 + $0x6c8] sm:$0xff]  ;;  %v311_v20 = vld [vmem:[#allocation5 + $0x738] sm:$0xff]  ;;  %v312_v36 = vld [vmem:[#allocation5 + $0x740] sm:$0xff] }
  0x90   :  { %1436 = vmatpush1.bf16.msra.mxu0 %v1435_v16  ;;  %847 = vmatmul.mubr.f32.vlgmr.msra.gmra.mrb[0].mxu1 %v73_v15  ;;  %v1457_v15 = vpack.c.bf16 %v261_v9, %v257_v8  ;;  %v260_v16 = vld [vmem:[#allocation5 + $0x5a0] sm:$0xff]  ;;  %v303_v8 = vld [vmem:[#allocation5 + $0x6f8] sm:$0xff] }
  0x91   :  { %1632 = vmatpush1.bf16.msra.mxu1 %v1631_v17  ;;  %1438 = vmatprep.subr.bf16.mxu0 %v1437_v18  ;;  %v258_v17 = vld [vmem:[#allocation5 + $0x590] sm:$0xff]  ;;  %v1459_v25 = vpack.c.bf16 %v260_v16, %v256_v13  ;;  %v300_v13 = vld [vmem:[#allocation5 + $0x6e0] sm:$0xff] }
  0x92   :  { %1634 = vmatprep.subr.bf16.mxu1 %v1633_v22  ;;  %v262_v18 = vld [vmem:[#allocation5 + $0x5b0] sm:$0xff]  ;;  %v76_v22 = vld [vmem:[#allocation2 + $0x18] sm:$0xff] }
  0x93   :  { %633 = vmatprep.mubr.f32.mxu0 %v76_v22  ;;  %917 = vmatprep.mubr.f32.mxu1 %v76_v22  ;;  %v1655_v26 = vpack.c.bf16 %v262_v18, %v258_v17  ;;  %v302_v16 = vld [vmem:[#allocation5 + $0x6f0] sm:$0xff]  ;;  %v305_v17 = vld [vmem:[#allocation5 + $0x708] sm:$0xff]  ;;  %v320_v48 = vld [vmem:[#allocation5 + $0x780] sm:$0xff] }
  0x94   :  { %1440 = vmatpush1.bf16.msra.mxu0 %v1439_v28  ;;  %v264_v28 = vld [vmem:[#allocation5 + $0x5c0] sm:$0xff]  ;;  %v309_v18 = vld [vmem:[#allocation5 + $0x728] sm:$0xff] }
  0x95   :  { %1636 = vmatpush1.bf16.msra.mxu1 %v1635_v29  ;;  %1442 = vmatprep.subr.bf16.mxu0 %v1441_v30  ;;  %v268_v29 = vld [vmem:[#allocation5 + $0x5e0] sm:$0xff]  ;;  %v266_v30 = vld [vmem:[#allocation5 + $0x5d0] sm:$0xff]  ;;  %v1481_v23 = vpack.c.bf16 %v309_v18, %v305_v17  ;;  %v75_v17 = vld [vmem:[#allocation2 + $0x10] sm:$0xff] }
  0x96   :  { %1638 = vmatprep.subr.bf16.mxu1 %v1637_v34  ;;  %v277_v34 = vld [vmem:[#allocation5 + $0x628] sm:$0xff]  ;;  %v1463_v37 = vpack.c.bf16 %v268_v29, %v264_v28  ;;  %v1659_v38 = vpack.c.bf16 %v270_v32, %v266_v30  ;;  %v310_v28 = vld [vmem:[#allocation5 + $0x730] sm:$0xff]  ;;  %v319_v32 = vld [vmem:[#allocation5 + $0x778] sm:$0xff] }
  0x97   :  { %v1465_v39 = vpack.c.bf16 %v277_v34, %v273_v33  ;;  %v313_v29 = vld [vmem:[#allocation5 + $0x748] sm:$0xff]  ;;  %v328_v60 = vld [vmem:[#allocation5 + $0x7c0] sm:$0xff] }
  0x98   :  { %1444 = vmatpush1.bf16.msra.mxu0 %v1443_v40  ;;  %v272_v40 = vld [vmem:[#allocation5 + $0x600] sm:$0xff]  ;;  %v317_v30 = vld [vmem:[#allocation5 + $0x768] sm:$0xff] }
  0x99   :  { %1640 = vmatpush1.bf16.msra.mxu1 %v1639_v41  ;;  %1446 = vmatprep.subr.bf16.mxu0 %v1445_v42  ;;  %v276_v41 = vld [vmem:[#allocation5 + $0x620] sm:$0xff]  ;;  %v274_v42 = vld [vmem:[#allocation5 + $0x610] sm:$0xff]  ;;  %v1485_v35 = vpack.c.bf16 %v317_v30, %v313_v29  ;;  %v359_v29 = vld [vmem:[#allocation5 + $0x8b8] sm:$0xff] }
  0x9a   :  { %1642 = vmatprep.subr.bf16.mxu1 %v1641_v46  ;;  %v285_v46 = vld [vmem:[#allocation5 + $0x668] sm:$0xff]  ;;  %v1467_v49 = vpack.c.bf16 %v276_v41, %v272_v40  ;;  %v1663_v50 = vpack.c.bf16 %v278_v44, %v274_v42  ;;  %v318_v40 = vld [vmem:[#allocation5 + $0x770] sm:$0xff]  ;;  %v327_v44 = vld [vmem:[#allocation5 + $0x7b8] sm:$0xff] }
  0x9b   :  { %v1469_v51 = vpack.c.bf16 %v285_v46, %v281_v45  ;;  %v321_v41 = vld [vmem:[#allocation5 + $0x788] sm:$0xff]  ;;  %v78_v30 = vld [vmem:[#allocation2 + $0x28] sm:$0xff] }
  0x9c   :  { %1448 = vmatpush1.bf16.msra.mxu0 %v1447_v52  ;;  %v280_v52 = vld [vmem:[#allocation5 + $0x640] sm:$0xff]  ;;  %v325_v42 = vld [vmem:[#allocation5 + $0x7a8] sm:$0xff] }
  0x9d   :  { %1644 = vmatpush1.bf16.msra.mxu1 %v1643_v53  ;;  %1450 = vmatprep.subr.bf16.mxu0 %v1449_v54  ;;  %v284_v53 = vld [vmem:[#allocation5 + $0x660] sm:$0xff]  ;;  %v282_v54 = vld [vmem:[#allocation5 + $0x650] sm:$0xff]  ;;  %v1489_v47 = vpack.c.bf16 %v325_v42, %v321_v41  ;;  %v363_v41 = vld [vmem:[#allocation5 + $0x8d8] sm:$0xff] }
  0x9e   :  { %1646 = vmatprep.subr.bf16.mxu1 %v1645_v58  ;;  %v293_v58 = vld [vmem:[#allocation5 + $0x6a8] sm:$0xff]  ;;  %v1471_v61 = vpack.c.bf16 %v284_v53, %v280_v52  ;;  %v1667_v62 = vpack.c.bf16 %v286_v56, %v282_v54  ;;  %v326_v52 = vld [vmem:[#allocation5 + $0x7b0] sm:$0xff]  ;;  %v335_v56 = vld [vmem:[#allocation5 + $0x7f8] sm:$0xff] }
  0x9f   :  { %v1473_v63 = vpack.c.bf16 %v293_v58, %v289_v57  ;;  %v329_v53 = vld [vmem:[#allocation5 + $0x7c8] sm:$0xff]  ;;  %v367_v42 = vld [vmem:[#allocation5 + $0x8f8] sm:$0xff] }
  0xa0   :  { %1452 = vmatpush1.bf16.msra.mxu0 %v1451_v0  ;;  %v288_v0 = vld [vmem:[#allocation5 + $0x680] sm:$0xff]  ;;  %v333_v54 = vld [vmem:[#allocation5 + $0x7e8] sm:$0xff] }
  0xa1   :  { %1648 = vmatpush1.bf16.msra.mxu1 %v1647_v1  ;;  %1454 = vmatprep.subr.bf16.mxu0 %v1453_v2  ;;  %v292_v1 = vld [vmem:[#allocation5 + $0x6a0] sm:$0xff]  ;;  %v290_v2 = vld [vmem:[#allocation5 + $0x690] sm:$0xff]  ;;  %v1493_v59 = vpack.c.bf16 %v333_v54, %v329_v53  ;;  %v371_v53 = vld [vmem:[#allocation5 + $0x918] sm:$0xff] }
  0xa2   :  { %1650 = vmatprep.subr.bf16.mxu1 %v1649_v6  ;;  %v301_v6 = vld [vmem:[#allocation5 + $0x6e8] sm:$0xff]  ;;  %v1475_v9 = vpack.c.bf16 %v292_v1, %v288_v0  ;;  %v1671_v10 = vpack.c.bf16 %v294_v4, %v290_v2  ;;  %v334_v0 = vld [vmem:[#allocation5 + $0x7f0] sm:$0xff]  ;;  %v343_v4 = vld [vmem:[#allocation5 + $0x838] sm:$0xff] }
  0xa3   :  { %v1477_v11 = vpack.c.bf16 %v301_v6, %v297_v5  ;;  %v337_v1 = vld [vmem:[#allocation5 + $0x808] sm:$0xff]  ;;  %v375_v54 = vld [vmem:[#allocation5 + $0x938] sm:$0xff] }
  0xa4   :  { %1456 = vmatpush1.bf16.msra.mxu0 %v1455_v12  ;;  %v296_v12 = vld [vmem:[#allocation5 + $0x6c0] sm:$0xff]  ;;  %v341_v2 = vld [vmem:[#allocation5 + $0x828] sm:$0xff] }
  0xa5   :  { %1652 = vmatpush1.bf16.msra.mxu1 %v1651_v14  ;;  %1458 = vmatprep.subr.bf16.mxu0 %v1457_v15  ;;  %v298_v14 = vld [vmem:[#allocation5 + $0x6d0] sm:$0xff]  ;;  %v1673_v15 = vpack.c.bf16 %v303_v8, %v299_v7  ;;  %v1479_v21 = vpack.c.bf16 %v300_v13, %v296_v12  ;;  %v1497_v7 = vpack.c.bf16 %v341_v2, %v337_v1  ;;  %v336_v8 = vld [vmem:[#allocation5 + $0x800] sm:$0xff]  ;;  %v345_v13 = vld [vmem:[#allocation5 + $0x848] sm:$0xff] }
  0xa6   :  { %1654 = vmatprep.subr.bf16.mxu1 %v1653_v19  ;;  %v307_v19 = vld [vmem:[#allocation5 + $0x718] sm:$0xff]  ;;  %v1675_v22 = vpack.c.bf16 %v302_v16, %v298_v14  ;;  %v342_v12 = vld [vmem:[#allocation5 + $0x830] sm:$0xff]  ;;  %v349_v14 = vld [vmem:[#allocation5 + $0x868] sm:$0xff] }
  0xa7   :  { %v351_v16 = vld [vmem:[#allocation5 + $0x878] sm:$0xff] }
  0xa8   :  { %1460 = vmatpush1.bf16.msra.mxu0 %v1459_v25  ;;  %v308_v25 = vld [vmem:[#allocation5 + $0x720] sm:$0xff]  ;;  %v379_v1 = vld [vmem:[#allocation5 + $0x958] sm:$0xff] }
  0xa9   :  { %1656 = vmatpush1.bf16.msra.mxu1 %v1655_v26  ;;  %1462 = vmatprep.subr.bf16.mxu0 %v1461_v27  ;;  %v306_v26 = vld [vmem:[#allocation5 + $0x710] sm:$0xff]  ;;  %v1677_v27 = vpack.c.bf16 %v311_v20, %v307_v19  ;;  %v1483_v33 = vpack.c.bf16 %v308_v25, %v304_v24  ;;  %v1501_v20 = vpack.c.bf16 %v349_v14, %v345_v13  ;;  %v383_v2 = vld [vmem:[#allocation5 + $0x978] sm:$0xff] }
  0xaa   :  { %1658 = vmatprep.subr.bf16.mxu1 %v1657_v31  ;;  %v315_v31 = vld [vmem:[#allocation5 + $0x758] sm:$0xff]  ;;  %v1679_v34 = vpack.c.bf16 %v310_v28, %v306_v26  ;;  %v350_v25 = vld [vmem:[#allocation5 + $0x870] sm:$0xff]  ;;  %v353_v26 = vld [vmem:[#allocation5 + $0x888] sm:$0xff] }
  0xab   :  { %v355_v28 = vld [vmem:[#allocation5 + $0x898] sm:$0xff] }
  0xac   :  { %1464 = vmatpush1.bf16.msra.mxu0 %v1463_v37  ;;  %v316_v37 = vld [vmem:[#allocation5 + $0x760] sm:$0xff]  ;;  %v387_v13 = vld [vmem:[#allocation5 + $0x998] sm:$0xff] }
  0xad   :  { %1660 = vmatpush1.bf16.msra.mxu1 %v1659_v38  ;;  %1466 = vmatprep.subr.bf16.mxu0 %v1465_v39  ;;  %v314_v38 = vld [vmem:[#allocation5 + $0x750] sm:$0xff]  ;;  %v1681_v39 = vpack.c.bf16 %v319_v32, %v315_v31  ;;  %v1487_v45 = vpack.c.bf16 %v316_v37, %v312_v36  ;;  %v1701_v37 = vpack.c.bf16 %v359_v29, %v355_v28  ;;  %v391_v14 = vld [vmem:[#allocation5 + $0x9b8] sm:$0xff] }
  0xae   :  { %1662 = vmatprep.subr.bf16.mxu1 %v1661_v43  ;;  %v323_v43 = vld [vmem:[#allocation5 + $0x798] sm:$0xff]  ;;  %v1683_v46 = vpack.c.bf16 %v318_v40, %v314_v38  ;;  %v354_v36 = vld [vmem:[#allocation5 + $0x890] sm:$0xff]  ;;  %v365_v40 = vld [vmem:[#allocation5 + $0x8e8] sm:$0xff] }
  0xaf   :  { %v358_v38 = vld [vmem:[#allocation5 + $0x8b0] sm:$0xff] }
  0xb0   :  { %1468 = vmatpush1.bf16.msra.mxu0 %v1467_v49  ;;  %v324_v49 = vld [vmem:[#allocation5 + $0x7a0] sm:$0xff] }
  0xb1   :  { %1664 = vmatpush1.bf16.msra.mxu1 %v1663_v50  ;;  %1470 = vmatprep.subr.bf16.mxu0 %v1469_v51  ;;  %v322_v50 = vld [vmem:[#allocation5 + $0x790] sm:$0xff]  ;;  %v1685_v51 = vpack.c.bf16 %v327_v44, %v323_v43  ;;  %v1491_v57 = vpack.c.bf16 %v324_v49, %v320_v48  ;;  %v1703_v44 = vpack.c.bf16 %v358_v38, %v354_v36  ;;  %v405_v36 = vld [vmem:[#allocation5 + $0xa28] sm:$0xff]  ;;  %v407_v38 = vld [vmem:[#allocation5 + $0xa38] sm:$0xff] }
  0xb2   :  { %1666 = vmatprep.subr.bf16.mxu1 %v1665_v55  ;;  %v331_v55 = vld [vmem:[#allocation5 + $0x7d8] sm:$0xff]  ;;  %v1687_v58 = vpack.c.bf16 %v326_v52, %v322_v50  ;;  %v362_v48 = vld [vmem:[#allocation5 + $0x8d0] sm:$0xff]  ;;  %v1705_v49 = vpack.c.bf16 %v367_v42, %v363_v41  ;;  %v373_v52 = vld [vmem:[#allocation5 + $0x928] sm:$0xff] }
  0xb3   :  { %v366_v50 = vld [vmem:[#allocation5 + $0x8f0] sm:$0xff]  ;;  %v400_v42 = vld [vmem:[#allocation5 + $0xa00] sm:$0xff] }
  0xb4   :  { %1472 = vmatpush1.bf16.msra.mxu0 %v1471_v61  ;;  %v332_v61 = vld [vmem:[#allocation5 + $0x7e0] sm:$0xff] }
  0xb5   :  { %1668 = vmatpush1.bf16.msra.mxu1 %v1667_v62  ;;  %1474 = vmatprep.subr.bf16.mxu0 %v1473_v63  ;;  %v330_v62 = vld [vmem:[#allocation5 + $0x7d0] sm:$0xff]  ;;  %v1689_v63 = vpack.c.bf16 %v335_v56, %v331_v55  ;;  %v1495_v5 = vpack.c.bf16 %v332_v61, %v328_v60  ;;  %v1707_v56 = vpack.c.bf16 %v366_v50, %v362_v48  ;;  %v413_v48 = vld [vmem:[#allocation5 + $0xa68] sm:$0xff]  ;;  %v415_v50 = vld [vmem:[#allocation5 + $0xa78] sm:$0xff] }
  0xb6   :  { %1670 = vmatprep.subr.bf16.mxu1 %v1669_v3  ;;  %v339_v3 = vld [vmem:[#allocation5 + $0x818] sm:$0xff]  ;;  %v1691_v6 = vpack.c.bf16 %v334_v0, %v330_v62  ;;  %v370_v60 = vld [vmem:[#allocation5 + $0x910] sm:$0xff]  ;;  %v1709_v61 = vpack.c.bf16 %v375_v54, %v371_v53  ;;  %v381_v0 = vld [vmem:[#allocation5 + $0x968] sm:$0xff] }
  0xb7   :  { %v374_v62 = vld [vmem:[#allocation5 + $0x930] sm:$0xff]  ;;  %v408_v54 = vld [vmem:[#allocation5 + $0xa40] sm:$0xff] }
  0xb8   :  { %1476 = vmatpush1.bf16.msra.mxu0 %v1475_v9  ;;  %v340_v9 = vld [vmem:[#allocation5 + $0x820] sm:$0xff] }
  0xb9   :  { %1672 = vmatpush1.bf16.msra.mxu1 %v1671_v10  ;;  %1478 = vmatprep.subr.bf16.mxu0 %v1477_v11  ;;  %v338_v10 = vld [vmem:[#allocation5 + $0x810] sm:$0xff]  ;;  %v1693_v11 = vpack.c.bf16 %v343_v4, %v339_v3  ;;  %v1499_v18 = vpack.c.bf16 %v340_v9, %v336_v8  ;;  %v1711_v4 = vpack.c.bf16 %v374_v62, %v370_v60  ;;  %v421_v60 = vld [vmem:[#allocation5 + $0xaa8] sm:$0xff]  ;;  %v423_v62 = vld [vmem:[#allocation5 + $0xab8] sm:$0xff] }
  0xba   :  { %1674 = vmatprep.subr.bf16.mxu1 %v1673_v15  ;;  %v347_v15 = vld [vmem:[#allocation5 + $0x858] sm:$0xff]  ;;  %v1695_v19 = vpack.c.bf16 %v342_v12, %v338_v10  ;;  %v378_v8 = vld [vmem:[#allocation5 + $0x950] sm:$0xff]  ;;  %v1713_v9 = vpack.c.bf16 %v383_v2, %v379_v1  ;;  %v389_v12 = vld [vmem:[#allocation5 + $0x9a8] sm:$0xff] }
  0xbb   :  { %v1697_v24 = vpack.c.bf16 %v351_v16, %v347_v15  ;;  %v382_v10 = vld [vmem:[#allocation5 + $0x970] sm:$0xff]  ;;  %v416_v2 = vld [vmem:[#allocation5 + $0xa80] sm:$0xff] }
  0xbc   :  { %1480 = vmatpush1.bf16.msra.mxu0 %v1479_v21  ;;  %v344_v21 = vld [vmem:[#allocation5 + $0x840] sm:$0xff]  ;;  %v1715_v16 = vpack.c.bf16 %v382_v10, %v378_v8  ;;  %v429_v8 = vld [vmem:[#allocation5 + $0xae8] sm:$0xff]  ;;  %v431_v10 = vld [vmem:[#allocation5 + $0xaf8] sm:$0xff] }
  0xbd   :  { %1676 = vmatpush1.bf16.msra.mxu1 %v1675_v22  ;;  %1482 = vmatprep.subr.bf16.mxu0 %v1481_v23  ;;  %v348_v22 = vld [vmem:[#allocation5 + $0x860] sm:$0xff]  ;;  %v346_v23 = vld [vmem:[#allocation5 + $0x850] sm:$0xff] }
  0xbe   :  { %1678 = vmatprep.subr.bf16.mxu1 %v1677_v27  ;;  %v357_v27 = vld [vmem:[#allocation5 + $0x8a8] sm:$0xff]  ;;  %v1503_v31 = vpack.c.bf16 %v348_v22, %v344_v21  ;;  %v1699_v32 = vpack.c.bf16 %v350_v25, %v346_v23  ;;  %v1717_v21 = vpack.c.bf16 %v391_v14, %v387_v13  ;;  %v390_v22 = vld [vmem:[#allocation5 + $0x9b0] sm:$0xff]  ;;  %v395_v25 = vld [vmem:[#allocation5 + $0x9d8] sm:$0xff] }
  0xbf   :  { %v393_v23 = vld [vmem:[#allocation5 + $0x9c8] sm:$0xff]  ;;  %v424_v14 = vld [vmem:[#allocation5 + $0xac0] sm:$0xff] }
  0xc0   :  { %1484 = vmatpush1.bf16.msra.mxu0 %v1483_v33  ;;  %v1505_v33 = vpack.c.bf16 %v357_v27, %v353_v26  ;;  %v399_v26 = vld [vmem:[#allocation5 + $0x9f8] sm:$0xff] }
  0xc1   :  { %1680 = vmatpush1.bf16.msra.mxu1 %v1679_v34  ;;  %1486 = vmatprep.subr.bf16.mxu0 %v1485_v35  ;;  %v352_v34 = vld [vmem:[#allocation5 + $0x880] sm:$0xff] }
  0xc2   :  { %1682 = vmatprep.subr.bf16.mxu1 %v1681_v39  ;;  %v356_v35 = vld [vmem:[#allocation5 + $0x8a0] sm:$0xff]  ;;  %v361_v39 = vld [vmem:[#allocation5 + $0x8c8] sm:$0xff] }
  0xc3   :  { %v1507_v43 = vpack.c.bf16 %v356_v35, %v352_v34  ;;  %v398_v34 = vld [vmem:[#allocation5 + $0x9f0] sm:$0xff]  ;;  %v401_v35 = vld [vmem:[#allocation5 + $0xa08] sm:$0xff] }
  0xc4   :  { %1488 = vmatpush1.bf16.msra.mxu0 %v1487_v45  ;;  %v1509_v45 = vpack.c.bf16 %v365_v40, %v361_v39  ;;  %v1529_v41 = vpack.c.bf16 %v405_v36, %v401_v35 }
  0xc5   :  { %1684 = vmatpush1.bf16.msra.mxu1 %v1683_v46  ;;  %1490 = vmatprep.subr.bf16.mxu0 %v1489_v47  ;;  %v360_v46 = vld [vmem:[#allocation5 + $0x8c0] sm:$0xff] }
  0xc6   :  { %1686 = vmatprep.subr.bf16.mxu1 %v1685_v51  ;;  %v364_v47 = vld [vmem:[#allocation5 + $0x8e0] sm:$0xff]  ;;  %v369_v51 = vld [vmem:[#allocation5 + $0x908] sm:$0xff] }
  0xc7   :  { %v1511_v55 = vpack.c.bf16 %v364_v47, %v360_v46  ;;  %v406_v46 = vld [vmem:[#allocation5 + $0xa30] sm:$0xff]  ;;  %v409_v47 = vld [vmem:[#allocation5 + $0xa48] sm:$0xff] }
  0xc8   :  { %1492 = vmatpush1.bf16.msra.mxu0 %v1491_v57  ;;  %v1513_v57 = vpack.c.bf16 %v373_v52, %v369_v51  ;;  %v1533_v53 = vpack.c.bf16 %v413_v48, %v409_v47 }
  0xc9   :  { %1688 = vmatpush1.bf16.msra.mxu1 %v1687_v58  ;;  %1494 = vmatprep.subr.bf16.mxu0 %v1493_v59  ;;  %v368_v58 = vld [vmem:[#allocation5 + $0x900] sm:$0xff] }
  0xca   :  { %1690 = vmatprep.subr.bf16.mxu1 %v1689_v63  ;;  %v372_v59 = vld [vmem:[#allocation5 + $0x920] sm:$0xff]  ;;  %v377_v63 = vld [vmem:[#allocation5 + $0x948] sm:$0xff] }
  0xcb   :  { %v1515_v3 = vpack.c.bf16 %v372_v59, %v368_v58  ;;  %v414_v58 = vld [vmem:[#allocation5 + $0xa70] sm:$0xff]  ;;  %v417_v59 = vld [vmem:[#allocation5 + $0xa88] sm:$0xff] }
  0xcc   :  { %1496 = vmatpush1.bf16.msra.mxu0 %v1495_v5  ;;  %v1517_v5 = vpack.c.bf16 %v381_v0, %v377_v63  ;;  %v1537_v1 = vpack.c.bf16 %v421_v60, %v417_v59 }
  0xcd   :  { %1692 = vmatpush1.bf16.msra.mxu1 %v1691_v6  ;;  %1498 = vmatprep.subr.bf16.mxu0 %v1497_v7  ;;  %v376_v6 = vld [vmem:[#allocation5 + $0x940] sm:$0xff] }
  0xce   :  { %1694 = vmatprep.subr.bf16.mxu1 %v1693_v11  ;;  %v380_v7 = vld [vmem:[#allocation5 + $0x960] sm:$0xff]  ;;  %v385_v11 = vld [vmem:[#allocation5 + $0x988] sm:$0xff] }
  0xcf   :  { %634 = vmatmul.mubr.f32.vlgmr.msra.gmra.mrb[0].mxu0 %v75_v17  ;;  %v1519_v15 = vpack.c.bf16 %v380_v7, %v376_v6  ;;  %v422_v6 = vld [vmem:[#allocation5 + $0xab0] sm:$0xff]  ;;  %v425_v7 = vld [vmem:[#allocation5 + $0xac8] sm:$0xff] }
  0xd0   :  { %1500 = vmatpush1.bf16.msra.mxu0 %v1499_v18  ;;  %918 = vmatmul.mubr.f32.vlgmr.msra.gmra.mrb[0].mxu1 %v75_v17  ;;  %v1521_v17 = vpack.c.bf16 %v389_v12, %v385_v11  ;;  %v384_v18 = vld [vmem:[#allocation5 + $0x980] sm:$0xff]  ;;  %v1541_v13 = vpack.c.bf16 %v429_v8, %v425_v7 }
  0xd1   :  { %1696 = vmatpush1.bf16.msra.mxu1 %v1695_v19  ;;  %1502 = vmatprep.subr.bf16.mxu0 %v1501_v20  ;;  %v388_v19 = vld [vmem:[#allocation5 + $0x9a0] sm:$0xff]  ;;  %v386_v20 = vld [vmem:[#allocation5 + $0x990] sm:$0xff] }
  0xd2   :  { %1698 = vmatprep.subr.bf16.mxu1 %v1697_v24  ;;  %704 = vmatprep.mubr.f32.mxu0 %v78_v30  ;;  %v397_v24 = vld [vmem:[#allocation5 + $0x9e8] sm:$0xff]  ;;  %v1523_v27 = vpack.c.bf16 %v388_v19, %v384_v18  ;;  %v1719_v28 = vpack.c.bf16 %v390_v22, %v386_v20  ;;  %v430_v18 = vld [vmem:[#allocation5 + $0xaf0] sm:$0xff]  ;;  %v439_v22 = vld [vmem:[#allocation5 + $0xb38] sm:$0xff] }
  0xd3   :  { %988 = vmatprep.mubr.f32.mxu1 %v78_v30  ;;  %v1525_v29 = vpack.c.bf16 %v397_v24, %v393_v23  ;;  %v392_v30 = vld [vmem:[#allocation5 + $0x9c0] sm:$0xff]  ;;  %v433_v19 = vld [vmem:[#allocation5 + $0xb08] sm:$0xff] }
  0xd4   :  { %1504 = vmatpush1.bf16.msra.mxu0 %v1503_v31  ;;  %v396_v31 = vld [vmem:[#allocation5 + $0x9e0] sm:$0xff]  ;;  %v437_v20 = vld [vmem:[#allocation5 + $0xb28] sm:$0xff] }
  0xd5   :  { %1700 = vmatpush1.bf16.msra.mxu1 %v1699_v32  ;;  %1506 = vmatprep.subr.bf16.mxu0 %v1505_v33  ;;  %v394_v32 = vld [vmem:[#allocation5 + $0x9d0] sm:$0xff]  ;;  %v1721_v33 = vpack.c.bf16 %v399_v26, %v395_v25  ;;  %v1527_v39 = vpack.c.bf16 %v396_v31, %v392_v30  ;;  %v1545_v25 = vpack.c.bf16 %v437_v20, %v433_v19  ;;  %v432_v26 = vld [vmem:[#allocation5 + $0xb00] sm:$0xff]  ;;  %v441_v31 = vld [vmem:[#allocation5 + $0xb48] sm:$0xff] }
  0xd6   :  { %1702 = vmatprep.subr.bf16.mxu1 %v1701_v37  ;;  %v403_v37 = vld [vmem:[#allocation5 + $0xa18] sm:$0xff]  ;;  %v1723_v40 = vpack.c.bf16 %v398_v34, %v394_v32  ;;  %v438_v30 = vld [vmem:[#allocation5 + $0xb30] sm:$0xff]  ;;  %v445_v32 = vld [vmem:[#allocation5 + $0xb68] sm:$0xff] }
  0xd7   :  { %v447_v34 = vld [vmem:[#allocation5 + $0xb78] sm:$0xff]  ;;  %v464_v8 = vld [vmem:[#allocation5 + $0xc00] sm:$0xff] }
  0xd8   :  { %1508 = vmatpush1.bf16.msra.mxu0 %v1507_v43  ;;  %v404_v43 = vld [vmem:[#allocation5 + $0xa20] sm:$0xff]  ;;  %v1113_v19 = vld [vmem:[%s2343_s3 + $0x110] sm:$0xff] }
  0xd9   :  { %1704 = vmatpush1.bf16.msra.mxu1 %v1703_v44  ;;  %1510 = vmatprep.subr.bf16.mxu0 %v1509_v45  ;;  %v402_v44 = vld [vmem:[#allocation5 + $0xa10] sm:$0xff]  ;;  %v1725_v45 = vpack.c.bf16 %v407_v38, %v403_v37  ;;  %v1531_v51 = vpack.c.bf16 %v404_v43, %v400_v42  ;;  %v1549_v37 = vpack.c.bf16 %v445_v32, %v441_v31  ;;  %v440_v38 = vld [vmem:[#allocation5 + $0xb40] sm:$0xff]  ;;  %v449_v43 = vld [vmem:[#allocation5 + $0xb88] sm:$0xff] }
  0xda   :  { %1706 = vmatprep.subr.bf16.mxu1 %v1705_v49  ;;  %v411_v49 = vld [vmem:[#allocation5 + $0xa58] sm:$0xff]  ;;  %v1727_v52 = vpack.c.bf16 %v406_v46, %v402_v44  ;;  %v446_v42 = vld [vmem:[#allocation5 + $0xb70] sm:$0xff]  ;;  %v453_v44 = vld [vmem:[#allocation5 + $0xba8] sm:$0xff] }
  0xdb   :  { %v455_v46 = vld [vmem:[#allocation5 + $0xbb8] sm:$0xff]  ;;  %v1114_v20 = vld [vmem:[%s2343_s3 + $0x118] sm:$0xff]  ;;  %v1079_v32 = vld [vmem:[%s2343_s3] sm:$0xff] }
  0xdc   :  { %1512 = vmatpush1.bf16.msra.mxu0 %v1511_v55  ;;  %v412_v55 = vld [vmem:[#allocation5 + $0xa60] sm:$0xff] }
  0xdd   :  { %1708 = vmatpush1.bf16.msra.mxu1 %v1707_v56  ;;  %1514 = vmatprep.subr.bf16.mxu0 %v1513_v57  ;;  %v410_v56 = vld [vmem:[#allocation5 + $0xa50] sm:$0xff]  ;;  %v1729_v57 = vpack.c.bf16 %v415_v50, %v411_v49  ;;  %v1535_v63 = vpack.c.bf16 %v412_v55, %v408_v54  ;;  %v1553_v49 = vpack.c.bf16 %v453_v44, %v449_v43  ;;  %v448_v50 = vld [vmem:[#allocation5 + $0xb80] sm:$0xff]  ;;  %v457_v55 = vld [vmem:[#allocation5 + $0xbc8] sm:$0xff] }
  0xde   :  { %1710 = vmatprep.subr.bf16.mxu1 %v1709_v61  ;;  %v419_v61 = vld [vmem:[#allocation5 + $0xa98] sm:$0xff]  ;;  %v1731_v0 = vpack.c.bf16 %v414_v58, %v410_v56  ;;  %v454_v54 = vld [vmem:[#allocation5 + $0xbb0] sm:$0xff]  ;;  %v461_v56 = vld [vmem:[#allocation5 + $0xbe8] sm:$0xff] }
  0xdf   :  { %v463_v58 = vld [vmem:[#allocation5 + $0xbf8] sm:$0xff]  ;;  %v1099_v44 = vld [vmem:[%s2343_s3 + $0xa0] sm:$0xff] }
  0xe0   :  { %1516 = vmatpush1.bf16.msra.mxu0 %v1515_v3  ;;  %v420_v3 = vld [vmem:[#allocation5 + $0xaa0] sm:$0xff] }
  0xe1   :  { %1712 = vmatpush1.bf16.msra.mxu1 %v1711_v4  ;;  %1518 = vmatprep.subr.bf16.mxu0 %v1517_v5  ;;  %v418_v4 = vld [vmem:[#allocation5 + $0xa90] sm:$0xff]  ;;  %v1733_v5 = vpack.c.bf16 %v423_v62, %v419_v61  ;;  %v1539_v11 = vpack.c.bf16 %v420_v3, %v416_v2  ;;  %v1557_v61 = vpack.c.bf16 %v461_v56, %v457_v55  ;;  %v456_v62 = vld [vmem:[#allocation5 + $0xbc0] sm:$0xff]  ;;  %v465_v3 = vld [vmem:[#allocation5 + $0xc08] sm:$0xff] }
  0xe2   :  { %1714 = vmatprep.subr.bf16.mxu1 %v1713_v9  ;;  %v427_v9 = vld [vmem:[#allocation5 + $0xad8] sm:$0xff]  ;;  %v1735_v12 = vpack.c.bf16 %v422_v6, %v418_v4  ;;  %v462_v2 = vld [vmem:[#allocation5 + $0xbf0] sm:$0xff]  ;;  %v469_v4 = vld [vmem:[#allocation5 + $0xc28] sm:$0xff] }
  0xe3   :  { %v1561_v7 = vpack.c.bf16 %v469_v4, %v465_v3  ;;  %v1121_v55 = vld [vmem:[%s2343_s3 + $0x150] sm:$0xff]  ;;  %v1122_v56 = vld [vmem:[%s2343_s3 + $0x158] sm:$0xff] }
  0xe4   :  { %1520 = vmatpush1.bf16.msra.mxu0 %v1519_v15  ;;  %v428_v15 = vld [vmem:[#allocation5 + $0xae0] sm:$0xff] }
  0xe5   :  { %1716 = vmatpush1.bf16.msra.mxu1 %v1715_v16  ;;  %1522 = vmatprep.subr.bf16.mxu0 %v1521_v17  ;;  %v426_v16 = vld [vmem:[#allocation5 + $0xad0] sm:$0xff]  ;;  %v1737_v17 = vpack.c.bf16 %v431_v10, %v427_v9  ;;  %v1543_v23 = vpack.c.bf16 %v428_v15, %v424_v14  ;;  %v468_v9 = vld [vmem:[#allocation5 + $0xc20] sm:$0xff]  ;;  %v467_v10 = vld [vmem:[#allocation5 + $0xc18] sm:$0xff] }
  0xe6   :  { %1718 = vmatprep.subr.bf16.mxu1 %v1717_v21  ;;  %v435_v21 = vld [vmem:[#allocation5 + $0xb18] sm:$0xff]  ;;  %v1739_v24 = vpack.c.bf16 %v430_v18, %v426_v16  ;;  %v77_v14 = vld [vmem:[#allocation2 + $0x20] sm:$0xff]  ;;  %v1563_v15 = vpack.c.bf16 %v468_v9, %v464_v8  ;;  %v1128_v9 = vld [vmem:[%s2343_s3 + $0x188] sm:$0xff] }
  0xe7   :  { %v1127_v8 = vld [vmem:[%s2343_s3 + $0x180] sm:$0xff] }
  0xe8   :  { %1524 = vmatpush1.bf16.msra.mxu0 %v1523_v27  ;;  %v436_v27 = vld [vmem:[#allocation5 + $0xb20] sm:$0xff] }
  0xe9   :  { %1720 = vmatpush1.bf16.msra.mxu1 %v1719_v28  ;;  %1526 = vmatprep.subr.bf16.mxu0 %v1525_v29  ;;  %v434_v28 = vld [vmem:[#allocation5 + $0xb10] sm:$0xff]  ;;  %v1741_v29 = vpack.c.bf16 %v439_v22, %v435_v21  ;;  %v1547_v35 = vpack.c.bf16 %v436_v27, %v432_v26  ;;  %v2021_v21 = vmov 0.0   ;;  %v1115_v27 = vld [vmem:[%s2343_s3 + $0x120] sm:$0xff] }
  0xea   :  { %1722 = vmatprep.subr.bf16.mxu1 %v1721_v33  ;;  %v443_v33 = vld [vmem:[#allocation5 + $0xb58] sm:$0xff]  ;;  %v1743_v36 = vpack.c.bf16 %v438_v30, %v434_v28  ;;  %v466_v22 = vld [vmem:[#allocation5 + $0xc10] sm:$0xff] }
  0xeb   :  { %v1096_v26 = vld [vmem:[%s2343_s3 + $0x88] sm:$0xff] }
  0xec   :  { %1528 = vmatpush1.bf16.msra.mxu0 %v1527_v39  ;;  %v444_v39 = vld [vmem:[#allocation5 + $0xb60] sm:$0xff]  ;;  %v1116_v28 = vld [vmem:[%s2343_s3 + $0x128] sm:$0xff] }
  0xed   :  { %1724 = vmatpush1.bf16.msra.mxu1 %v1723_v40  ;;  %1530 = vmatprep.subr.bf16.mxu0 %v1529_v41  ;;  %v442_v40 = vld [vmem:[#allocation5 + $0xb50] sm:$0xff]  ;;  %v1745_v41 = vpack.c.bf16 %v447_v34, %v443_v33  ;;  %v1551_v47 = vpack.c.bf16 %v444_v39, %v440_v38  ;;  %v1800_v34 = vpack.c.bf16 %v1116_v28, %v1115_v27  ;;  %v1118_v38 = vld [vmem:[%s2343_s3 + $0x138] sm:$0xff]  ;;  %v1089_v28 = vld [vmem:[%s2343_s3 + $0x50] sm:$0xff] }
  0xee   :  { %1726 = vmatprep.subr.bf16.mxu1 %v1725_v45  ;;  %v451_v45 = vld [vmem:[#allocation5 + $0xb98] sm:$0xff]  ;;  %v1747_v48 = vpack.c.bf16 %v446_v42, %v442_v40  ;;  %v1080_v33 = vld [vmem:[%s2343_s3 + $0x8] sm:$0xff]  ;;  %v1082_v42 = vld [vmem:[%s2343_s3 + $0x18] sm:$0xff] }
  0xef   :  { %v1763_v39 = vpack.c.bf16 %v1080_v33, %v1079_v32  ;;  %v1136_v32 = vld [vmem:[%s2343_s3 + $0x1c8] sm:$0xff]  ;;  %v1107_v33 = vld [vmem:[%s2343_s3 + $0xe0] sm:$0xff] }
  0xf0   :  { %1532 = vmatpush1.bf16.msra.mxu0 %v1531_v51  ;;  %v452_v51 = vld [vmem:[#allocation5 + $0xba0] sm:$0xff] }
  0xf1   :  { %1728 = vmatpush1.bf16.msra.mxu1 %v1727_v52  ;;  %1534 = vmatprep.subr.bf16.mxu0 %v1533_v53  ;;  %v450_v52 = vld [vmem:[#allocation5 + $0xb90] sm:$0xff]  ;;  %v1749_v53 = vpack.c.bf16 %v455_v46, %v451_v45  ;;  %v1555_v59 = vpack.c.bf16 %v452_v51, %v448_v50  ;;  %v1119_v46 = vld [vmem:[%s2343_s3 + $0x140] sm:$0xff] }
  0xf2   :  { %1730 = vmatprep.subr.bf16.mxu1 %v1729_v57  ;;  %v459_v57 = vld [vmem:[#allocation5 + $0xbd8] sm:$0xff]  ;;  %v1751_v60 = vpack.c.bf16 %v454_v54, %v450_v52  ;;  %v1100_v45 = vld [vmem:[%s2343_s3 + $0xa8] sm:$0xff]  ;;  %v1083_v50 = vld [vmem:[%s2343_s3 + $0x20] sm:$0xff] }
  0xf3   :  { %v1084_v51 = vld [vmem:[%s2343_s3 + $0x28] sm:$0xff]  ;;  %v1102_v54 = vld [vmem:[%s2343_s3 + $0xb8] sm:$0xff] }
  0xf4   :  { %1536 = vmatpush1.bf16.msra.mxu0 %v1535_v63  ;;  %v460_v63 = vld [vmem:[#allocation5 + $0xbe0] sm:$0xff] }
  0xf5   :  { %1732 = vmatpush1.bf16.msra.mxu1 %v1731_v0  ;;  %1538 = vmatprep.subr.bf16.mxu0 %v1537_v1  ;;  %v458_v0 = vld [vmem:[#allocation5 + $0xbd0] sm:$0xff]  ;;  %v1753_v1 = vpack.c.bf16 %v463_v58, %v459_v57  ;;  %v1771_v57 = vpack.c.bf16 %v1084_v51, %v1083_v50 }
  0xf6   :  { %1734 = vmatprep.subr.bf16.mxu1 %v1733_v5  ;;  %v1559_v5 = vpack.c.bf16 %v460_v63, %v456_v62  ;;  %v1755_v6 = vpack.c.bf16 %v462_v2, %v458_v0  ;;  %v1103_v62 = vld [vmem:[%s2343_s3 + $0xc0] sm:$0xff]  ;;  %v1104_v63 = vld [vmem:[%s2343_s3 + $0xc8] sm:$0xff] }
  0xf7   :  { %v1123_v0 = vld [vmem:[%s2343_s3 + $0x160] sm:$0xff]  ;;  %v1777_v3 = vpack.c.bf16 %v1104_v63, %v1103_v62  ;;  %v1140_v50 = vld [vmem:[%s2343_s3 + $0x1e8] sm:$0xff] }
  0xf8   :  { %1540 = vmatpush1.bf16.msra.mxu0 %v1539_v11  ;;  %v471_v11 = vld [vmem:[#allocation5 + $0xc38] sm:$0xff] }
  0xf9   :  { %1736 = vmatpush1.bf16.msra.mxu1 %v1735_v12  ;;  %1542 = vmatprep.subr.bf16.mxu0 %v1541_v13  ;;  %v1111_v12 = vld [vmem:[%s2343_s3 + $0x100] sm:$0xff]  ;;  %v1112_v13 = vld [vmem:[%s2343_s3 + $0x108] sm:$0xff]  ;;  %v1757_v16 = vpack.c.bf16 %v471_v11, %v467_v10  ;;  %v1818_v10 = vpack.c.bf16 %v1128_v9, %v1127_v8  ;;  %v1129_v11 = vld [vmem:[%s2343_s3 + $0x190] sm:$0xff] }
  0xfa   :  { %1738 = vmatprep.subr.bf16.mxu1 %v1737_v17  ;;  %v2020_v17 = vmov 0.0|0.0   ;;  %v1794_v18 = vpack.c.bf16 %v1112_v13, %v1111_v12  ;;  %v1130_v12 = vld [vmem:[%s2343_s3 + $0x198] sm:$0xff] }
  0xfb   :  { %v1821_v13 = vpack.c.bf16 %v1130_v12, %v1129_v11 }
  0xfc   :  { %1544 = vmatpush1.bf16.msra.mxu0 %v1543_v23  ;;  %v470_v23 = vld [vmem:[#allocation5 + $0xc30] sm:$0xff] }
  0xfd   :  { %1740 = vmatpush1.bf16.msra.mxu1 %v1739_v24  ;;  %1546 = vmatprep.subr.bf16.mxu0 %v1545_v25  ;;  %v1797_v24 = vpack.c.bf16 %v1114_v20, %v1113_v19  ;;  %v1095_v25 = vld [vmem:[%s2343_s3 + $0x80] sm:$0xff]  ;;  %v1759_v30 = vpack.c.bf16 %v470_v23, %v466_v22  ;;  %v1088_v19 = vld [vmem:[%s2343_s3 + $0x48] sm:$0xff]  ;;  %v1133_v22 = vld [vmem:[%s2343_s3 + $0x1b0] sm:$0xff] }
  0xfe   :  { %1742 = vmatprep.subr.bf16.mxu1 %v1741_v29  ;;  %v79_v29 = vld [vmem:[#allocation2 + $0x30] sm:$0xff]  ;;  %v1761_v31 = vpack.c.bf16 %v1096_v26, %v1095_v25  ;;  %v1134_v23 = vld [vmem:[%s2343_s3 + $0x1b8] sm:$0xff] }
  0xff   :  { %v1105_v25 = vld [vmem:[%s2343_s3 + $0xd0] sm:$0xff]  ;;  %v1106_v26 = vld [vmem:[%s2343_s3 + $0xd8] sm:$0xff] }
 0x100   :  { %1548 = vmatpush1.bf16.msra.mxu0 %v1547_v35  ;;  %v1097_v35 = vld [vmem:[%s2343_s3 + $0x90] sm:$0xff]  ;;  %v1781_v27 = vpack.c.bf16 %v1106_v26, %v1105_v25 }
 0x101   :  { %1744 = vmatpush1.bf16.msra.mxu1 %v1743_v36  ;;  %1550 = vmatprep.subr.bf16.mxu0 %v1549_v37  ;;  %v1098_v36 = vld [vmem:[%s2343_s3 + $0x98] sm:$0xff]  ;;  %v1117_v37 = vld [vmem:[%s2343_s3 + $0x130] sm:$0xff] }
 0x102   :  { %1746 = vmatprep.subr.bf16.mxu1 %v1745_v41  ;;  %v1765_v40 = vpack.c.bf16 %v1098_v36, %v1097_v35  ;;  %v1081_v41 = vld [vmem:[%s2343_s3 + $0x10] sm:$0xff]  ;;  %v1803_v43 = vpack.c.bf16 %v1118_v38, %v1117_v37  ;;  %v1108_v35 = vld [vmem:[%s2343_s3 + $0xe8] sm:$0xff]  ;;  %v1091_v37 = vld [vmem:[%s2343_s3 + $0x60] sm:$0xff] }
 0x103   :  { %v1785_v36 = vpack.c.bf16 %v1108_v35, %v1107_v33  ;;  %v1092_v38 = vld [vmem:[%s2343_s3 + $0x68] sm:$0xff] }
 0x104   :  { %1552 = vmatpush1.bf16.msra.mxu0 %v1551_v47  ;;  %v1120_v47 = vld [vmem:[%s2343_s3 + $0x148] sm:$0xff] }
 0x105   :  { %1748 = vmatpush1.bf16.msra.mxu1 %v1747_v48  ;;  %1554 = vmatprep.subr.bf16.mxu0 %v1553_v49  ;;  %v1767_v48 = vpack.c.bf16 %v1082_v42, %v1081_v41  ;;  %v1769_v49 = vpack.c.bf16 %v1100_v45, %v1099_v44  ;;  %v1806_v52 = vpack.c.bf16 %v1120_v47, %v1119_v46  ;;  %v1138_v41 = vld [vmem:[%s2343_s3 + $0x1d8] sm:$0xff]  ;;  %v1093_v46 = vld [vmem:[%s2343_s3 + $0x70] sm:$0xff] }
 0x106   :  { %1750 = vmatprep.subr.bf16.mxu1 %v1749_v53  ;;  %v1101_v53 = vld [vmem:[%s2343_s3 + $0xb0] sm:$0xff]  ;;  %v1110_v44 = vld [vmem:[%s2343_s3 + $0xf8] sm:$0xff] }
 0x107   :  { %v1773_v58 = vpack.c.bf16 %v1102_v54, %v1101_v53  ;;  %v1094_v47 = vld [vmem:[%s2343_s3 + $0x78] sm:$0xff] }
 0x108   :  { %1556 = vmatpush1.bf16.msra.mxu0 %v1555_v59  ;;  %v1085_v59 = vld [vmem:[%s2343_s3 + $0x30] sm:$0xff] }
 0x109   :  { %1752 = vmatpush1.bf16.msra.mxu1 %v1751_v60  ;;  %1558 = vmatprep.subr.bf16.mxu0 %v1557_v61  ;;  %v1086_v60 = vld [vmem:[%s2343_s3 + $0x38] sm:$0xff]  ;;  %v1809_v61 = vpack.c.bf16 %v1122_v56, %v1121_v55 }
 0x10a   :  { %1754 = vmatprep.subr.bf16.mxu1 %v1753_v1  ;;  %v1124_v1 = vld [vmem:[%s2343_s3 + $0x168] sm:$0xff]  ;;  %v1775_v2 = vpack.c.bf16 %v1086_v60, %v1085_v59  ;;  %v472_v59 = vld [vmem:[#allocation7] sm:$0xf] }
 0x10b   :  { %v1812_v4 = vpack.c.bf16 %v1124_v1, %v1123_v0 }
 0x10c   :  { %1560 = vmatpush1.bf16.msra.mxu0 %v1559_v5  ;;  %v1125_v5 = vld [vmem:[%s2343_s3 + $0x170] sm:$0xff] }
 0x10d   :  { %1756 = vmatpush1.bf16.msra.mxu1 %v1755_v6  ;;  %1562 = vmatprep.subr.bf16.mxu0 %v1561_v7  ;;  %v1126_v6 = vld [vmem:[%s2343_s3 + $0x178] sm:$0xff] }
 0x10e   :  { %1793 = vmatprep.subr.bf16.mxu1 %v2020_v17  ;;  %v1815_v7 = vpack.c.bf16 %v1126_v6, %v1125_v5 }
 0x10f   :  { %705 = vmatmul.mubr.f32.vlgmr.msra.gmra.mrb[0].mxu0 %v77_v14 }
 0x110   :  { %989 = vmatmul.mubr.f32.vlgmr.msra.gmra.mrb[0].mxu1 %v77_v14  ;;  %1564 = vmatpush1.bf16.msra.mxu0 %v1563_v15  ;;  %v1131_v14 = vld [vmem:[%s2343_s3 + $0x1a0] sm:$0xff]  ;;  %v1132_v15 = vld [vmem:[%s2343_s3 + $0x1a8] sm:$0xff] }
 0x111   :  { %775 = vmatprep.mubr.f32.mxu0 %v2021_v21  ;;  %1758 = vmatprep.subr.bf16.mxu0 %v1757_v16  ;;  %v1824_v16 = vpack.c.bf16 %v1132_v15, %v1131_v14 }
 0x112   :  { %1795 = vmatpush1.bf16.msra.mxu1 %v1794_v18  ;;  %v1087_v18 = vld [vmem:[%s2343_s3 + $0x40] sm:$0xff] }
 0x113   :  { %1796 = vmatprep.subr.bf16.mxu1 %v2020_v17  ;;  %v1779_v20 = vpack.c.bf16 %v1088_v19, %v1087_v18 }
 0x116   :  { %1798 = vmatpush1.bf16.msra.mxu1 %v1797_v24  ;;  %v1827_v24 = vpack.c.bf16 %v1134_v23, %v1133_v22 }
 0x117   :  { %1329 = vmatmul.mubr.msk.f32.vlgmr.msra.gmra.mrb[0].mxu0 %vm494_vm0, %v79_v29  ;;  %1799 = vmatprep.subr.bf16.mxu1 %v2020_v17 }
 0x118   :  { %1760 = vmatpush1.bf16.msra.mxu0 %v1759_v30  ;;  %1059 = vmatprep.mubr.f32.mxu0 %v2021_v21 }
 0x119   :  { %1762 = vmatprep.subr.bf16.mxu0 %v1761_v31  ;;  %v1135_v31 = vld [vmem:[%s2343_s3 + $0x1c0] sm:$0xff] }
 0x11a   :  { %1801 = vmatpush1.bf16.msra.mxu1 %v1800_v34  ;;  %v1830_v34 = vpack.c.bf16 %v1136_v32, %v1135_v31 }
 0x11b   :  { %1330 = vmatmul.mubr.msk.f32.vlgmr.msra.gmra.mrb[2].mxu0 %vm494_vm0, %v79_v29  ;;  %1802 = vmatprep.subr.bf16.mxu1 %v2020_v17  ;;  %v1090_v29 = vld [vmem:[%s2343_s3 + $0x58] sm:$0xff] }
 0x11c   :  { %1764 = vmatpush3.bf16.msra.mxu0 %v1763_v39  ;;  %v1783_v30 = vpack.c.bf16 %v1090_v29, %v1089_v28  ;;  %v1787_v39 = vpack.c.bf16 %v1092_v38, %v1091_v37 }
 0x11d   :  { %1766 = vmatprep.subr.bf16.mxu0 %v1765_v40  ;;  %v1137_v40 = vld [vmem:[%s2343_s3 + $0x1d0] sm:$0xff] }
 0x11e   :  { %1804 = vmatpush1.bf16.msra.mxu1 %v1803_v43  ;;  %v1833_v42 = vpack.c.bf16 %v1138_v41, %v1137_v40  ;;  %v1109_v43 = vld [vmem:[%s2343_s3 + $0xf0] sm:$0xff] }
 0x11f   :  { %1805 = vmatprep.subr.bf16.mxu1 %v2020_v17  ;;  %v1789_v45 = vpack.c.bf16 %v1110_v44, %v1109_v43 }
 0x120   :  { %1768 = vmatpush3.bf16.msra.mxu0 %v1767_v48  ;;  %v1791_v48 = vpack.c.bf16 %v1094_v47, %v1093_v46 }
 0x121   :  { %1770 = vmatprep.subr.bf16.mxu0 %v1769_v49  ;;  %v1139_v49 = vld [vmem:[%s2343_s3 + $0x1e0] sm:$0xff] }
 0x122   :  { %1807 = vmatpush1.bf16.msra.mxu1 %v1806_v52  ;;  %v1836_v51 = vpack.c.bf16 %v1140_v50, %v1139_v49  ;;  %v1141_v52 = vld [vmem:[%s2343_s3 + $0x1f0] sm:$0xf]  ;;  %s2022_s3 = smov [#allocation11]  }
 0x123   :  { %1808 = vmatprep.subr.bf16.mxu1 %v2020_v17  ;;  %s1314_s8 = sshll.u32 %s2022_s3, 4  ;;  %s1315_s8 = int_to_ptr.vmem [resolvable:$true] %s1314_s8 }
 0x124   :  { %1772 = vmatpush3.bf16.msra.mxu0 %v1771_v57  ;;  %s1960_s9 = scalar_lea.vmem %s1315_s8, 512  ;;  %p1965_p5 = scmp.lt.s32.totalorder %s1315_s8, %s1315_s8 }
 0x125   :  { %1774 = vmatprep.subr.bf16.mxu0 %v1773_v58  ;;  %p1961_p4 = scmp.ne.s32.totalorder %s1315_s8, %s1960_s9  ;;  %p1966_p6 = scmp.lt.s32.totalorder %s1960_s9, %s1960_s9 }
 0x126   :  { %1810 = vmatpush1.bf16.msra.mxu1 %v1809_v61 }
 0x127   :  { %1811 = vmatprep.subr.bf16.mxu1 %v2020_v17  ;;  %p1967_p7 = por %p1966_p6, %p1965_p5 }
 0x128   :  { %1776 = vmatpush3.bf16.msra.mxu0 %v1775_v2 }
 0x129   :  { %1778 = vmatprep.subr.bf16.mxu0 %v1777_v3  ;;  %p1968_p8 = pnand %p1967_p7, %p1961_p4 }
 0x12a   :  { %1813 = vmatpush1.bf16.msra.mxu1 %v1812_v4 }
 0x12b   :  { %1814 = vmatprep.subr.bf16.mxu1 %v2020_v17 }
 0x12c   :  { %1780 = vmatpush3.bf16.msra.mxu0 %v1779_v20 }
 0x12d   :  { %1782 = vmatprep.subr.bf16.mxu0 %v1781_v27 }
 0x12e   :  { %1816 = vmatpush1.bf16.msra.mxu1 %v1815_v7 }
 0x12f   :  { %1817 = vmatprep.subr.bf16.mxu1 %v2020_v17 }
 0x130   :  { %1784 = vmatpush3.bf16.msra.mxu0 %v1783_v30 }
 0x131   :  { %1786 = vmatprep.subr.bf16.mxu0 %v1785_v36 }
 0x132   :  { %1819 = vmatpush1.bf16.msra.mxu1 %v1818_v10 }
 0x133   :  { %1820 = vmatprep.subr.bf16.mxu1 %v2020_v17 }
 0x134   :  { %1788 = vmatpush3.bf16.msra.mxu0 %v1787_v39 }
 0x135   :  { %1790 = vmatprep.subr.bf16.mxu0 %v1789_v45 }
 0x136   :  { %1822 = vmatpush1.bf16.msra.mxu1 %v1821_v13 }
 0x137   :  { %1823 = vmatprep.subr.bf16.mxu1 %v2020_v17 }
 0x138   :  { %1792 = vmatpush3.bf16.msra.mxu0 %v1791_v48 }
 0x13a   :  { %1825 = vmatpush1.bf16.msra.mxu1 %v1824_v16 }
 0x13b   :  { %1826 = vmatprep.subr.bf16.mxu1 %v2020_v17 }
 0x13e   :  { %1828 = vmatpush1.bf16.msra.mxu1 %v1827_v24 }
 0x13f   :  { %1829 = vmatprep.subr.bf16.mxu1 %v2020_v17 }
 0x142   :  { %1831 = vmatpush1.bf16.msra.mxu1 %v1830_v34 }
 0x143   :  { %1832 = vmatprep.subr.bf16.mxu1 %v2020_v17 }
 0x146   :  { %1834 = vmatpush1.bf16.msra.mxu1 %v1833_v42 }
 0x147   :  { %1835 = vmatprep.subr.bf16.mxu1 %v2020_v17  ;;  %v474_v17 = vlaneseq }
 0x149   :  { %v475_v53 = vshrl.u32 %v474_v17, 7 }
 0x14a   :  { %1837 = vmatpush1.bf16.msra.mxu1 %v1836_v51 }
 0x14b   :  { %1286 = vmatprep.subr.mxu1 %v2021_v21  ;;  %v476_v55 = vsub.s32 0, %v475_v53  ;;  %v480_v57 = vsub.s32 1, %v475_v53  ;;  %v484_v58 = vsub.s32 2, %v475_v53  ;;  %v488_v60 = vsub.s32 3, %v475_v53 }
 0x14d   :  { %v477_v61 = vrot.slane %v472_v59, %v476_v55  ;;  %v481_v62 = vrot.slane %v472_v59, %v480_v57  ;;  %v485_v63 = vrot.slane %v472_v59, %v484_v58  ;;  %v489_v0 = vrot.slane %v472_v59, %v488_v60 }
 0x14e   :  { %1332 = vmatpush1.msk.msra.mxu1 %vm1152_vm1, %v1141_v52 }
 0x1e3   :  { %v990_v54 = vpop.f32.mrb[0].mxu1 }
 0x1e4   :  { %v992_v56 = vpop.f32.mrb[1].mxu1  ;;  %v1840_v4 = vadd.f32 %v990_v54, %v485_v63 }
 0x1e5   :  { %v1842_v5 = vadd.f32 %v992_v56, %v489_v0 }
 0x1ea   :  { %v777_v21 = vpop.f32.mrb[0].mxu0 }
 0x1eb   :  { %v1838_v1 = vadd.f32 %v777_v21, %v477_v61  ;;  %v779_v2 = vpop.f32.mrb[1].mxu0 }
 0x1ec   :  { %v1839_v3 = vadd.f32 %v779_v2, %v481_v62 }
 0x1ed   :  { %1864 = vtanh.f32 %v1838_v1  ;;  %v1075_v8 = vmax.f32 %v1838_v1, 0.0 }
 0x1ee   :  { %1866 = vtanh.f32 %v1839_v3  ;;  %v1076_v6 = vmax.f32 %v1839_v3, 0.0  ;;  %v1061_v7 = vpop.f32.mrb[2].mxu0 }
 0x1ef   :  { %v1841_v9 = vadd.f32 %v1840_v4, %v1061_v7  ;;  %v1063_v10 = vpop.f32.mrb[3].mxu0 }
 0x1f0   :  { %v1843_v11 = vadd.f32 %v1842_v5, %v1063_v10  ;;  %1220 = vmatprep.mubr.f32.mxu0 %v1076_v6 }
 0x1f1   :  { %1868 = vtanh.f32 %v1841_v9  ;;  %1221 = vmatmul.mubr.f32.vlgmr.msra.gmra.mrb[4].mxu0 %v1075_v8  ;;  %v1077_v13 = vmax.f32 %v1841_v9, 0.0 }
 0x1f2   :  { %1870 = vtanh.f32 %v1843_v11  ;;  %v1078_v12 = vmax.f32 %v1843_v11, 0.0 }
 0x1f4   :  { %1333 = vmatprep.mubr.msk.f32.mxu1 %vm1073_vm2, %v1078_v12 }
 0x1f5   :  { %1291 = vmatmul.mubr.f32.vlgmr.msra.gmra.mrb[2].mxu1 %v1077_v13 }
 0x1f7   :  { %v1865_v14 = vpop.eup %1864 }
 0x1f8   :  { %v1867_v15 = vpop.eup %1866  ;;  %1070 = vst [vmem:[#allocation11] sm:$0xff] %v1865_v14 }
 0x1f9   :  { %1071 = vst [vmem:[#allocation11 + $0x8] sm:$0xff] %v1867_v15 }
 0x1fb   :  { %v1869_v16 = vpop.eup %1868 }
 0x1fc   :  { %v1871_v18 = vpop.eup %1870  ;;  %1072 = vst [vmem:[#allocation11 + $0x10] sm:$0xff] %v1869_v16 }
 0x1fd   :  { %1074 = vst.msk [vmem:[#allocation11 + $0x18] sm:$0xff] %vm1073_vm2, %v1871_v18 }
 0x1fe   :  { %1971 = shalt.err (!%p1968_p8)
}
 0x1ff   :  { %s1972_s12 = scalar_lea.hbm %s2346_s6, 512 }
 0x200   :  { %p1973_p9 = scmp.ne.s32.totalorder %s2346_s6, %s1972_s12  ;;  %p1976_p10 = scmp.lt.u32.totalorder %s1972_s12, %s2346_s6 }
 0x202   :  { %p1978_p11 = pnand %p1976_p10, %p1973_p9 }
 0x204   :  { %1981 = shalt.err (!%p1978_p11)
}
 0x205   :  { %1317 = dma.vmem_to_hbm [thread:$0]  %s1315_s8, 512, %s2346_s6, [#allocation12]   ;;  %v1331_v22 = vld [vmem:[#allocation8] ss:$0 sm:$0xff]  ;;  %vm1296_vm3 = vcmask 80896  }
 0x206   :  { %s2023_s2 = smov [#allocation10]  }
 0x207   :  { %s1304_s14 = sshll.u32 %s2023_s2, 4  ;;  %s1305_s14 = int_to_ptr.vmem [resolvable:$true] %s1304_s14 }
 0x208   :  { %s1982_s20 = scalar_lea.vmem %s1305_s14, 128  ;;  %p1987_p13 = scmp.lt.s32.totalorder %s1305_s14, %s1305_s14 }
 0x209   :  { %p1983_p12 = scmp.ne.s32.totalorder %s1305_s14, %s1982_s20  ;;  %p1988_p0 = scmp.lt.s32.totalorder %s1982_s20, %s1982_s20 }
 0x20b   :  { %p1989_p1 = por %p1988_p0, %p1987_p13 }
 0x20d   :  { %p1990_p2 = pnand %p1989_p1, %p1983_p12 }
 0x2c4   :  { %v1366_v19 = vpop.f32.mrb[4].mxu0 }
 0x2c5   :  { %v1367_v20 = vpop.f32.mrb[5].mxu0 }
 0x2c6   :  { %v1368_v23 = vadd.f32 %v1367_v20, %v1366_v19 }
 0x2c8   :  { %v1223_v24 = vadd.f32 %v1368_v23, %v1331_v22  ;;  %v1292_v25 = vpop.f32.mrb[2].mxu1 }
 0x2c9   :  { %v1294_v26 = vpop.f32.mrb[3].mxu1 }
 0x2ca   :  { %v1293_v27 = vadd.f32 %v1292_v25, %v1223_v24 }
 0x2cc   :  { %1297 = vst.msk [vmem:[#allocation10] sm:$0xff] %vm1296_vm3, %v1293_v27 }
 0x2cd   :  { %1993 = shalt.err (!%p1990_p2)
}
 0x2ce   :  { %s1994_s21 = scalar_lea.hbm %s2345_s5, 128 }
 0x2cf   :  { %p1995_p3 = scmp.ne.s32.totalorder %s2345_s5, %s1994_s21  ;;  %p1998_p4 = scmp.lt.u32.totalorder %s1994_s21, %s2345_s5 }
 0x2d1   :  { %p2000_p5 = pnand %p1998_p4, %p1995_p3 }
 0x2d3   :  { %2003 = shalt.err (!%p2000_p5)
}
 0x2d4   :  { %1307 = dma.vmem_to_hbm [thread:$0]  %s1305_s14, 128, %s2345_s5, [#allocation4]  }
 0x2d5   :  { %2010 = dma.done.wait [#allocation4], 128  }
 0x2d6   :  { %2011 = vsyncadd [#allocation4], 4294967168 }
 0x2d7   :  { %2012 = dma.done.wait [#allocation12], 512  }
 0x2d8   :  { %2013 = vsyncadd [#allocation12], 4294966784 }
 0x2d9   :  { %1324 = vsyncpa [#allocation3], 1 }
 0x2da   :  { %1325 = vsyncpa [#allocation6], 1 }
 0x2db   :  { %1326 = vsyncpa [#allocation9], 1 }
 0x2dc   :  { %1327 = vsyncpa [#allocation4], 1 }
 0x2dd   :  { %1328 = vsyncpa [#allocation12], 1 }

</bundles_post_ra>
